<compile_context>
chip_gen: v6e
topology: v6e:2x2x1
jax: 0.10.0
libtpu: 0.0.40
codegen_flags: <defaults>
</compile_context>

<pallas_src>
import jax
import jax.numpy as jnp
from jax.experimental import pallas as pl
from jax.experimental.pallas import tpu as pltpu

# ------------------------------- dimensions ----------------------------------
D_IN = 784                          # 28 * 28 (kept unpadded; full-dim blocks)
H, H_PAD = 400, 512                 # hidden padded to 4 * 128 (weights only)
L, L_PAD = 20, 128                  # latent; fused head places logvar at lane 128
HEAD_PAD = 2 * L_PAD                # fused [mu | logvar] head width

TILE_B = 512                        # max batch rows per grid step (all TPU gens)


# ----------------------------- Pallas kernel ---------------------------------
def vae_kernel(
    x_ref, eps_ref,
    w1_ref, b1_ref,
    wh_ref, bh_ref,
    w3_ref, b3_ref,
    w4_ref, b4_ref,
    recon_ref, mu_ref, logvar_ref,
):
    x = x_ref[...].astype(jnp.bfloat16)                                # (tb, 784)

    # ---- encode ----
    h1 = jnp.dot(x, w1_ref[...], preferred_element_type=jnp.float32)
    h1 = jnp.maximum(h1 + b1_ref[...], 0.0)                            # (tb, 512)

    # fused mu/logvar head: lanes [0:128) = mu, [128:256) = logvar
    head = jnp.dot(h1.astype(jnp.bfloat16), wh_ref[...],
                   preferred_element_type=jnp.float32) + bh_ref[...]   # (tb, 256)
    mu = head[:, :L]                                                   # (tb, 20)
    logvar = head[:, L_PAD:L_PAD + L]                                  # (tb, 20)

    # ---- reparameterize (training mode; eps supplied by caller) ----
    std = jnp.exp(0.5 * logvar)
    z = eps_ref[...] * std + mu                                        # (tb, 20)

    # ---- decode ----
    h3 = jnp.dot(z.astype(jnp.bfloat16), w3_ref[...],
                 preferred_element_type=jnp.float32)
    h3 = jnp.maximum(h3 + b3_ref[...], 0.0)                            # (tb, 512)

    logits = jnp.dot(h3.astype(jnp.bfloat16), w4_ref[...],
                     preferred_element_type=jnp.float32) + b4_ref[...]  # (tb, 784)

    recon_ref[...] = jax.nn.sigmoid(logits).astype(recon_ref.dtype)     # bf16 out
    mu_ref[...] = mu
    logvar_ref[...] = logvar


# --------------------------- parameter packing --------------------------------
def prepare_params(params):
    """One-time weight packing: pad hidden dim to 512, fuse mu/logvar heads,
    cast weights to bf16.  Call once at load time (NOT inside the hot path)."""
    (w1, b1, w21, b21, w22, b22, w3, b3, w4, b4) = params

    w1p = jnp.pad(w1, ((0, 0), (0, H_PAD - H))).astype(jnp.bfloat16)   # (784, 512)
    b1p = jnp.pad(b1, ((0, 0), (0, H_PAD - H)))                        # (1, 512)

    whp = jnp.zeros((H_PAD, HEAD_PAD), jnp.float32)
    whp = whp.at[:H, :L].set(w21).at[:H, L_PAD:L_PAD + L].set(w22)
    whp = whp.astype(jnp.bfloat16)                                     # (512, 256)
    bhp = jnp.zeros((1, HEAD_PAD), jnp.float32)
    bhp = bhp.at[:, :L].set(b21).at[:, L_PAD:L_PAD + L].set(b22)       # (1, 256)

    w3p = jnp.pad(w3, ((0, 0), (0, H_PAD - H))).astype(jnp.bfloat16)   # (20, 512)
    b3p = jnp.pad(b3, ((0, 0), (0, H_PAD - H)))                        # (1, 512)
    w4p = jnp.pad(w4, ((0, H_PAD - H), (0, 0))).astype(jnp.bfloat16)   # (512, 784)
    b4p = b4                                                           # (1, 784)

    return (w1p, b1p, whp, bhp, w3p, b3p, w4p, b4p)


# ------------------------------ tile picking -----------------------------------
def _pick_tile_b(B, max_tile=TILE_B):
    """Batch tile: multiple of 8 (or the full batch) dividing B when possible,
    preferring >= 2 grid steps so the 'parallel' axis can use both v7x TCs."""
    if B <= max_tile:
        half = B // 2
        if half >= 8 and half % 8 == 0 and B % half == 0:
            return half                      # two grid steps, no batch padding
        return B                             # single full-dim block
    cands = [t for t in range(8, max_tile + 1, 8) if B % t == 0]
    if cands:
        return max(cands)                    # B > max_tile => >= 2 grid steps
    return max_tile                          # rare: requires batch padding


# ------------------------------- wrapper ---------------------------------------
@jax.jit
def vae_forward(x_img, eps, prepped):
    """x_img: (B, 1, 28, 28) float32 (NCHW); eps: (B, 20) float32.
    Returns (recon bf16 (B,784), mu f32 (B,20), logvar f32 (B,20))."""
    B = x_img.shape[0]
    x = x_img.reshape(B, D_IN)                          # x.view(-1, 784); free

    tile_b = _pick_tile_b(B, TILE_B)
    grid_b = pl.cdiv(B, tile_b)
    b_pad = grid_b * tile_b
    if b_pad != B:                                      # rare fallback path
        x = jnp.pad(x, ((0, b_pad - B), (0, 0)))
        eps = jnp.pad(eps, ((0, b_pad - B), (0, 0)))

    act = lambda width: pl.BlockSpec((tile_b, width), lambda i: (i, 0))
    res = lambda a: pl.BlockSpec(a.shape, lambda i: (0, 0))   # VMEM-resident

    in_specs = [act(D_IN), act(L)] + [res(a) for a in prepped]
    out_specs = (act(D_IN), act(L), act(L))
    out_shape = (
        jax.ShapeDtypeStruct((b_pad, D_IN), jnp.bfloat16),    # recon (lane-dense)
        jax.ShapeDtypeStruct((b_pad, L), jnp.float32),        # mu
        jax.ShapeDtypeStruct((b_pad, L), jnp.float32),        # logvar
    )

    weight_bytes = sum(int(a.size) * int(a.dtype.itemsize) for a in prepped)
    cost = pl.CostEstimate(
        flops=2 * b_pad * (D_IN * H_PAD + H_PAD * HEAD_PAD + L * H_PAD + H_PAD * D_IN),
        transcendentals=b_pad * (L + D_IN),                   # exp + sigmoid
        bytes_accessed=int(b_pad * (D_IN * 4 + L * 4          # x, eps in
                                    + D_IN * 2 + 2 * L * 4)   # recon, mu, logvar out
                           + weight_bytes),
    )

    recon, mu, logvar = pl.pallas_call(
        vae_kernel,
        grid=(grid_b,),
        in_specs=in_specs,
        out_specs=out_specs,
        out_shape=out_shape,
        compiler_params=pltpu.CompilerParams(
            dimension_semantics=("parallel",),    # batch axis -> both TCs on v7x
            vmem_limit_bytes=32 << 20,            # covers TILE_B=512 + dbl-buffered weights
        ),
        cost_estimate=cost,
    )(x, eps, *prepped)

    if b_pad != B:
        recon, mu, logvar = recon[:B], mu[:B], logvar[:B]
    return recon, mu, logvar


# --------------------------- parameter init -----------------------------------
def init_linear(key, fan_in, fan_out):
    """PyTorch nn.Linear default init: U(-1/sqrt(fan_in), 1/sqrt(fan_in)).
    Weight returned pre-transposed to (fan_in, fan_out)."""
    kw, kb = jax.random.split(key)
    bound = 1.0 / jnp.sqrt(fan_in)
    w = jax.random.uniform(kw, (fan_in, fan_out), jnp.float32, -bound, bound)
    b = jax.random.uniform(kb, (1, fan_out), jnp.float32, -bound, bound)
    return w, b


def init_params(key):
    k1, k21, k22, k3, k4 = jax.random.split(key, 5)
    w1, b1 = init_linear(k1, 784, 400)
    w21, b21 = init_linear(k21, 400, 20)
    w22, b22 = init_linear(k22, 400, 20)
    w3, b3 = init_linear(k3, 20, 400)
    w4, b4 = init_linear(k4, 400, 784)
    return (w1, b1, w21, b21, w22, b22, w3, b3, w4, b4)


# ------------------------------ reference -------------------------------------
def vae_ref(x_img, eps, params):
    """Mirrors the kernel's bf16-operand / f32-accumulate arithmetic."""
    (w1, b1, w21, b21, w22, b22, w3, b3, w4, b4) = params
    bf = lambda a: a.astype(jnp.bfloat16).astype(jnp.float32)
    x = bf(x_img.reshape(-1, D_IN))
    h1 = jnp.maximum(x @ bf(w1) + b1, 0.0)
    mu = bf(h1) @ bf(w21) + b21
    logvar = bf(h1) @ bf(w22) + b22
    z = eps * jnp.exp(0.5 * logvar) + mu
    h3 = jnp.maximum(bf(z) @ bf(w3) + b3, 0.0)
    recon = jax.nn.sigmoid(bf(h3) @ bf(w4) + b4)
    return recon, mu, logvar


# --------------------------------- main ----------------------------------------
if __name__ == "__main__":
    key = jax.random.PRNGKey(0)
    kx, keps, kp = jax.random.split(key, 3)

    B = 2
    x_img = jax.random.uniform(kx, (B, 1, 28, 28), jnp.float32)    # NCHW input
    eps = jax.random.normal(keps, (B, L), jnp.float32)             # reparam noise
    params = init_params(kp)
    prepped = prepare_params(params)                               # one-time packing

    recon, mu, logvar = jax.block_until_ready(vae_forward(x_img, eps, prepped))

    r_ref, mu_r, lv_r = vae_ref(x_img, eps, params)
    assert recon.shape == (B, 784) and mu.shape == (B, 20) and logvar.shape == (B, 20)
    assert jnp.allclose(recon.astype(jnp.float32), r_ref, atol=2e-2, rtol=2e-2)
    assert jnp.allclose(mu, mu_r, atol=2e-2, rtol=2e-2)
    assert jnp.allclose(logvar, lv_r, atol=2e-2, rtol=2e-2)

    print("KERNEL_OK")
</pallas_src>

<mosaic_0001>
module attributes {stable_mosaic.version = 11 : i64} {
  func.func @vae_kernel(%arg0: i32, %arg1: memref<2x784xf32, #tpu.memory_space<vmem>>, %arg2: memref<2x20xf32, #tpu.memory_space<vmem>>, %arg3: memref<784x512xbf16, #tpu.memory_space<vmem>>, %arg4: memref<1x512xf32, #tpu.memory_space<vmem>>, %arg5: memref<512x256xbf16, #tpu.memory_space<vmem>>, %arg6: memref<1x256xf32, #tpu.memory_space<vmem>>, %arg7: memref<20x512xbf16, #tpu.memory_space<vmem>>, %arg8: memref<1x512xf32, #tpu.memory_space<vmem>>, %arg9: memref<512x784xbf16, #tpu.memory_space<vmem>>, %arg10: memref<1x784xf32, #tpu.memory_space<vmem>>, %arg11: memref<2x784xbf16, #tpu.memory_space<vmem>>, %arg12: memref<2x20xf32, #tpu.memory_space<vmem>>, %arg13: memref<2x20xf32, #tpu.memory_space<vmem>>) attributes {dimension_semantics = [#tpu.dimension_semantics<parallel>], iteration_bounds = array<i64: 1>, scalar_prefetch = 0 : i64, scratch_operands = 0 : i64, tpu.core_type = #tpu.core_type<tc>, window_params = [{transform_indices = @transform_0, window_bounds = array<i64: 2, 784>}, {transform_indices = @transform_1, window_bounds = array<i64: 2, 20>}, {pipeline_mode = #tpu.pipeline_mode<synchronous>, transform_indices = @transform_2, window_bounds = array<i64: 784, 512>}, {pipeline_mode = #tpu.pipeline_mode<synchronous>, transform_indices = @transform_3, window_bounds = array<i64: 1, 512>}, {pipeline_mode = #tpu.pipeline_mode<synchronous>, transform_indices = @transform_4, window_bounds = array<i64: 512, 256>}, {pipeline_mode = #tpu.pipeline_mode<synchronous>, transform_indices = @transform_5, window_bounds = array<i64: 1, 256>}, {pipeline_mode = #tpu.pipeline_mode<synchronous>, transform_indices = @transform_6, window_bounds = array<i64: 20, 512>}, {pipeline_mode = #tpu.pipeline_mode<synchronous>, transform_indices = @transform_7, window_bounds = array<i64: 1, 512>}, {pipeline_mode = #tpu.pipeline_mode<synchronous>, transform_indices = @transform_8, window_bounds = array<i64: 512, 784>}, {pipeline_mode = #tpu.pipeline_mode<synchronous>, transform_indices = @transform_9, window_bounds = array<i64: 1, 784>}, {transform_indices = @transform_10, window_bounds = array<i64: 2, 784>}, {transform_indices = @transform_11, window_bounds = array<i64: 2, 20>}, {transform_indices = @transform_12, window_bounds = array<i64: 2, 20>}]} {
    %c0 = arith.constant 0 : index
    %c0_0 = arith.constant 0 : index
    %0 = vector.load %arg1[%c0, %c0_0] : memref<2x784xf32, #tpu.memory_space<vmem>>, vector<2x784xf32>
    %1 = arith.truncf %0 : vector<2x784xf32> to vector<2x784xbf16>
    %c0_1 = arith.constant 0 : index
    %c0_2 = arith.constant 0 : index
    %2 = vector.load %arg3[%c0_1, %c0_2] : memref<784x512xbf16, #tpu.memory_space<vmem>>, vector<784x512xbf16>
    %cst = arith.constant dense<0.000000e+00> : vector<2x512xf32>
    %3 = tpu.matmul %1, %2, %cst {dimension_numbers = #tpu.dot_dimension_numbers<[1], [0], [0], [1], [0, 0, 1, 1], [], []>} : vector<2x784xbf16>, vector<784x512xbf16>, vector<2x512xf32> -> vector<2x512xf32>
    %c0_3 = arith.constant 0 : index
    %c0_4 = arith.constant 0 : index
    %4 = vector.load %arg4[%c0_3, %c0_4] : memref<1x512xf32, #tpu.memory_space<vmem>>, vector<1x512xf32>
    %5 = vector.broadcast %4 : vector<1x512xf32> to vector<2x512xf32>
    %6 = arith.addf %3, %5 : vector<2x512xf32>
    %cst_5 = arith.constant 0.000000e+00 : f32
    %7 = vector.broadcast %cst_5 : f32 to vector<2x512xf32>
    %8 = arith.maximumf %6, %7 : vector<2x512xf32>
    %9 = arith.truncf %8 : vector<2x512xf32> to vector<2x512xbf16>
    %c0_6 = arith.constant 0 : index
    %c0_7 = arith.constant 0 : index
    %10 = vector.load %arg5[%c0_6, %c0_7] : memref<512x256xbf16, #tpu.memory_space<vmem>>, vector<512x256xbf16>
    %cst_8 = arith.constant dense<0.000000e+00> : vector<2x256xf32>
    %11 = tpu.matmul %9, %10, %cst_8 {dimension_numbers = #tpu.dot_dimension_numbers<[1], [0], [0], [1], [0, 0, 1, 1], [], []>} : vector<2x512xbf16>, vector<512x256xbf16>, vector<2x256xf32> -> vector<2x256xf32>
    %c0_9 = arith.constant 0 : index
    %c0_10 = arith.constant 0 : index
    %12 = vector.load %arg6[%c0_9, %c0_10] : memref<1x256xf32, #tpu.memory_space<vmem>>, vector<1x256xf32>
    %13 = vector.broadcast %12 : vector<1x256xf32> to vector<2x256xf32>
    %14 = arith.addf %11, %13 : vector<2x256xf32>
    %15 = vector.extract_strided_slice %14 {offsets = [0, 0], sizes = [2, 20], strides = [1, 1]} : vector<2x256xf32> to vector<2x20xf32>
    %16 = vector.extract_strided_slice %14 {offsets = [0, 128], sizes = [2, 20], strides = [1, 1]} : vector<2x256xf32> to vector<2x20xf32>
    %cst_11 = arith.constant 5.000000e-01 : f32
    %17 = vector.broadcast %cst_11 : f32 to vector<2x20xf32>
    %18 = arith.mulf %17, %16 : vector<2x20xf32>
    %19 = math.exp %18 : vector<2x20xf32>
    %c0_12 = arith.constant 0 : index
    %c0_13 = arith.constant 0 : index
    %20 = vector.load %arg2[%c0_12, %c0_13] : memref<2x20xf32, #tpu.memory_space<vmem>>, vector<2x20xf32>
    %21 = arith.mulf %20, %19 : vector<2x20xf32>
    %22 = arith.addf %21, %15 : vector<2x20xf32>
    %23 = arith.truncf %22 : vector<2x20xf32> to vector<2x20xbf16>
    %c0_14 = arith.constant 0 : index
    %c0_15 = arith.constant 0 : index
    %24 = vector.load %arg7[%c0_14, %c0_15] : memref<20x512xbf16, #tpu.memory_space<vmem>>, vector<20x512xbf16>
    %cst_16 = arith.constant dense<0.000000e+00> : vector<2x512xf32>
    %25 = tpu.matmul %23, %24, %cst_16 {dimension_numbers = #tpu.dot_dimension_numbers<[1], [0], [0], [1], [0, 0, 1, 1], [], []>} : vector<2x20xbf16>, vector<20x512xbf16>, vector<2x512xf32> -> vector<2x512xf32>
    %c0_17 = arith.constant 0 : index
    %c0_18 = arith.constant 0 : index
    %26 = vector.load %arg8[%c0_17, %c0_18] : memref<1x512xf32, #tpu.memory_space<vmem>>, vector<1x512xf32>
    %27 = vector.broadcast %26 : vector<1x512xf32> to vector<2x512xf32>
    %28 = arith.addf %25, %27 : vector<2x512xf32>
    %cst_19 = arith.constant 0.000000e+00 : f32
    %29 = vector.broadcast %cst_19 : f32 to vector<2x512xf32>
    %30 = arith.maximumf %28, %29 : vector<2x512xf32>
    %31 = arith.truncf %30 : vector<2x512xf32> to vector<2x512xbf16>
    %c0_20 = arith.constant 0 : index
    %c0_21 = arith.constant 0 : index
    %32 = vector.load %arg9[%c0_20, %c0_21] : memref<512x784xbf16, #tpu.memory_space<vmem>>, vector<512x784xbf16>
    %cst_22 = arith.constant dense<0.000000e+00> : vector<2x784xf32>
    %33 = tpu.matmul %31, %32, %cst_22 {dimension_numbers = #tpu.dot_dimension_numbers<[1], [0], [0], [1], [0, 0, 1, 1], [], []>} : vector<2x512xbf16>, vector<512x784xbf16>, vector<2x784xf32> -> vector<2x784xf32>
    %c0_23 = arith.constant 0 : index
    %c0_24 = arith.constant 0 : index
    %34 = vector.load %arg10[%c0_23, %c0_24] : memref<1x784xf32, #tpu.memory_space<vmem>>, vector<1x784xf32>
    %35 = vector.broadcast %34 : vector<1x784xf32> to vector<2x784xf32>
    %36 = arith.addf %33, %35 : vector<2x784xf32>
    %37 = arith.negf %36 : vector<2x784xf32>
    %38 = math.exp %37 : vector<2x784xf32>
    %cst_25 = arith.constant 1.000000e+00 : f32
    %39 = vector.broadcast %cst_25 : f32 to vector<2x784xf32>
    %40 = arith.addf %39, %38 : vector<2x784xf32>
    %41 = arith.divf %39, %40 : vector<2x784xf32>
    %42 = arith.truncf %41 : vector<2x784xf32> to vector<2x784xbf16>
    %c0_26 = arith.constant 0 : index
    %c0_27 = arith.constant 0 : index
    %43 = vector.load %arg11[%c0_26, %c0_27] : memref<2x784xbf16, #tpu.memory_space<vmem>>, vector<2x784xbf16>
    tpu.vector_store %arg11[%c0_26, %c0_27], %42 {strides = array<i32>} : memref<2x784xbf16, #tpu.memory_space<vmem>>, vector<2x784xbf16>,
    %c0_28 = arith.constant 0 : index
    %c0_29 = arith.constant 0 : index
    %44 = vector.load %arg12[%c0_28, %c0_29] : memref<2x20xf32, #tpu.memory_space<vmem>>, vector<2x20xf32>
    tpu.vector_store %arg12[%c0_28, %c0_29], %15 {strides = array<i32>} : memref<2x20xf32, #tpu.memory_space<vmem>>, vector<2x20xf32>,
    %c0_30 = arith.constant 0 : index
    %c0_31 = arith.constant 0 : index
    %45 = vector.load %arg13[%c0_30, %c0_31] : memref<2x20xf32, #tpu.memory_space<vmem>>, vector<2x20xf32>
    tpu.vector_store %arg13[%c0_30, %c0_31], %16 {strides = array<i32>} : memref<2x20xf32, #tpu.memory_space<vmem>>, vector<2x20xf32>,
    return
  }
  func.func @transform_0(%arg0: i32) -> (i32, i32) {
    %c0_i32 = arith.constant 0 : i32
    %c0_i32_0 = arith.constant 0 : i32
    return %arg0, %c0_i32 : i32, i32
  }
  func.func @transform_1(%arg0: i32) -> (i32, i32) {
    %c0_i32 = arith.constant 0 : i32
    %c0_i32_0 = arith.constant 0 : i32
    return %arg0, %c0_i32 : i32, i32
  }
  func.func @transform_2(%arg0: i32) -> (i32, i32) {
    %c0_i32 = arith.constant 0 : i32
    %c0_i32_0 = arith.constant 0 : i32
    %c0_i32_1 = arith.constant 0 : i32
    return %c0_i32, %c0_i32_0 : i32, i32
  }
  func.func @transform_3(%arg0: i32) -> (i32, i32) {
    %c0_i32 = arith.constant 0 : i32
    %c0_i32_0 = arith.constant 0 : i32
    %c0_i32_1 = arith.constant 0 : i32
    return %c0_i32, %c0_i32_0 : i32, i32
  }
  func.func @transform_4(%arg0: i32) -> (i32, i32) {
    %c0_i32 = arith.constant 0 : i32
    %c0_i32_0 = arith.constant 0 : i32
    %c0_i32_1 = arith.constant 0 : i32
    return %c0_i32, %c0_i32_0 : i32, i32
  }
  func.func @transform_5(%arg0: i32) -> (i32, i32) {
    %c0_i32 = arith.constant 0 : i32
    %c0_i32_0 = arith.constant 0 : i32
    %c0_i32_1 = arith.constant 0 : i32
    return %c0_i32, %c0_i32_0 : i32, i32
  }
  func.func @transform_6(%arg0: i32) -> (i32, i32) {
    %c0_i32 = arith.constant 0 : i32
    %c0_i32_0 = arith.constant 0 : i32
    %c0_i32_1 = arith.constant 0 : i32
    return %c0_i32, %c0_i32_0 : i32, i32
  }
  func.func @transform_7(%arg0: i32) -> (i32, i32) {
    %c0_i32 = arith.constant 0 : i32
    %c0_i32_0 = arith.constant 0 : i32
    %c0_i32_1 = arith.constant 0 : i32
    return %c0_i32, %c0_i32_0 : i32, i32
  }
  func.func @transform_8(%arg0: i32) -> (i32, i32) {
    %c0_i32 = arith.constant 0 : i32
    %c0_i32_0 = arith.constant 0 : i32
    %c0_i32_1 = arith.constant 0 : i32
    return %c0_i32, %c0_i32_0 : i32, i32
  }
  func.func @transform_9(%arg0: i32) -> (i32, i32) {
    %c0_i32 = arith.constant 0 : i32
    %c0_i32_0 = arith.constant 0 : i32
    %c0_i32_1 = arith.constant 0 : i32
    return %c0_i32, %c0_i32_0 : i32, i32
  }
  func.func @transform_10(%arg0: i32) -> (i32, i32) {
    %c0_i32 = arith.constant 0 : i32
    %c0_i32_0 = arith.constant 0 : i32
    return %arg0, %c0_i32 : i32, i32
  }
  func.func @transform_11(%arg0: i32) -> (i32, i32) {
    %c0_i32 = arith.constant 0 : i32
    %c0_i32_0 = arith.constant 0 : i32
    return %arg0, %c0_i32 : i32, i32
  }
  func.func @transform_12(%arg0: i32) -> (i32, i32) {
    %c0_i32 = arith.constant 0 : i32
    %c0_i32_0 = arith.constant 0 : i32
    return %arg0, %c0_i32 : i32, i32
  }
}

</mosaic_0001>

<bundles_post_ra>
// kernel: vae_forward.1
= control target key start
LH: loop header
LB: loop body
LE: loop exit
PB: predicated region body
PF: predicated region fallthrough
CT: control target
= control target key end

     0   :  { %18 = vsyncpa [#allocation3], 0  ;;  %v5588_v36 = vmov 1983009808   ;;  %v49_v38 = vlaneseq  ;;  %vm1290_vm0 = vcmask 130048   ;;  %s7288_s0 = inlined_call_operand.vmem [shape: f32[2,784], index: 0, kind: input, shape index: {}]   ;;  %s7289_s1 = inlined_call_operand.vmem [shape: f32[2,20], index: 1, kind: input, shape index: {}]   ;;  %s7290_s2 = inlined_call_operand.vmem [shape: bf16[784,512], index: 2, kind: input, shape index: {}]   ;;  %s7291_s3 = inlined_call_operand.vmem [shape: f32[1,512], index: 3, kind: input, shape index: {}]   ;;  %s7292_s4 = inlined_call_operand.vmem [shape: bf16[512,256], index: 4, kind: input, shape index: {}]   ;;  %s7293_s5 = inlined_call_operand.vmem [shape: f32[1,256], index: 5, kind: input, shape index: {}]   ;;  %s7294_s6 = inlined_call_operand.vmem [shape: bf16[20,512], index: 6, kind: input, shape index: {}]   ;;  %s7295_s7 = inlined_call_operand.vmem [shape: f32[1,512], index: 7, kind: input, shape index: {}]   ;;  %s7296_s8 = inlined_call_operand.vmem [shape: bf16[512,784], index: 8, kind: input, shape index: {}]   ;;  %s7297_s9 = inlined_call_operand.vmem [shape: f32[1,784], index: 9, kind: input, shape index: {}]   ;;  %s7298_s10 = inlined_call_operand.hbm [shape: bf16[2,784], index: 10, kind: output, shape index: {0}]   ;;  %s7299_s11 = inlined_call_operand.hbm [shape: f32[2,20], index: 11, kind: output, shape index: {1}]   ;;  %s7300_s12 = inlined_call_operand.hbm [shape: f32[2,20], index: 12, kind: output, shape index: {2}]  }
   0x1   :  { %v4772_v0 = vld [vmem:[%s7290_s2 + $0xe4] ss:$16 sps:$4 sm:$0xff]   ;;  %v4776_v2 = vld [vmem:[%s7290_s2 + $0xe0] ss:$16 sps:$4 sm:$0xff]   ;;  %v47_v37 = vunpack.c.l.s4 %v5588_v36  ;;  %v4885_v36 = vld [vmem:[%s7290_s2 + $0xc8] ss:$16 sps:$4 sm:$0xff]  }
   0x2   :  { %v4774_v1 = vld [vmem:[%s7290_s2 + $0x2e4] ss:$16 sps:$4 sm:$0xff]   ;;  %1294 = vmatprep.subr.bf16.mxu0 %v4772_v0  ;;  %v4777_v3 = vld [vmem:[%s7290_s2 + $0x2e0] ss:$16 sps:$4 sm:$0xff]   ;;  %v5776_v43 = vshrl.u32 %v49_v38, 7 }
   0x3   :  { %1335 = vmatprep.subr.bf16.mxu1 %v4774_v1  ;;  %v4778_v4 = vld [vmem:[%s7290_s2 + $0xc4] ss:$16 sps:$4 sm:$0xff]   ;;  %1295 = vmatpush1.bf16.msra.mxu0 %v4776_v2  ;;  %v4782_v6 = vld [vmem:[%s7290_s2 + $0xc0] ss:$16 sps:$4 sm:$0xff]   ;;  %v48_v42 = vunpack.c.0.s8 %v47_v37  ;;  %v4893_v38 = vld [vmem:[%s7290_s2 + $0xac] ss:$16 sps:$4 sm:$0xff]  }
   0x4   :  { %1336 = vmatpush1.bf16.msra.mxu1 %v4777_v3  ;;  %v4780_v5 = vld [vmem:[%s7290_s2 + $0x2c4] ss:$16 sps:$4 sm:$0xff]   ;;  %1296 = vmatprep.subr.bf16.mxu0 %v4778_v4  ;;  %v4783_v7 = vld [vmem:[%s7290_s2 + $0x2c0] ss:$16 sps:$4 sm:$0xff]  }
   0x5   :  { %1337 = vmatprep.subr.bf16.mxu1 %v4780_v5  ;;  %v4784_v8 = vld [vmem:[%s7290_s2 + $0xa4] ss:$16 sps:$4 sm:$0xff]   ;;  %v4788_v10 = vld [vmem:[%s7290_s2 + $0xa0] ss:$16 sps:$4 sm:$0xff]   ;;  %v5794_v49 = vsub.s32 %v48_v42, %v5776_v43  ;;  %v4899_v42 = vld [vmem:[%s7290_s2 + $0x8c] ss:$16 sps:$4 sm:$0xff]  }
   0x6   :  { %v4786_v9 = vld [vmem:[%s7290_s2 + $0x2a4] ss:$16 sps:$4 sm:$0xff]   ;;  %v4789_v11 = vld [vmem:[%s7290_s2 + $0x2a0] ss:$16 sps:$4 sm:$0xff]  }
   0x7   :  { %1297 = vmatpush1.bf16.msra.mxu0 %v4782_v6  ;;  %v4790_v12 = vld [vmem:[%s7290_s2 + $0x84] ss:$16 sps:$4 sm:$0xff]   ;;  %v4794_v14 = vld [vmem:[%s7290_s2 + $0x80] ss:$16 sps:$4 sm:$0xff]  }
   0x8   :  { %1338 = vmatpush1.bf16.msra.mxu1 %v4783_v7  ;;  %1298 = vmatprep.subr.bf16.mxu0 %v4784_v8  ;;  %v4792_v13 = vld [vmem:[%s7290_s2 + $0x284] ss:$16 sps:$4 sm:$0xff]   ;;  %v4795_v15 = vld [vmem:[%s7290_s2 + $0x280] ss:$16 sps:$4 sm:$0xff]  }
   0x9   :  { %1339 = vmatprep.subr.bf16.mxu1 %v4786_v9  ;;  %v4796_v16 = vld [vmem:[%s7290_s2 + $0x64] ss:$16 sps:$4 sm:$0xff]   ;;  %v4800_v18 = vld [vmem:[%s7290_s2 + $0x60] ss:$16 sps:$4 sm:$0xff]  }
   0xa   :  { %v4798_v17 = vld [vmem:[%s7290_s2 + $0x264] ss:$16 sps:$4 sm:$0xff]   ;;  %v4801_v19 = vld [vmem:[%s7290_s2 + $0x260] ss:$16 sps:$4 sm:$0xff]  }
   0xb   :  { %1299 = vmatpush1.bf16.msra.mxu0 %v4788_v10  ;;  %v4802_v20 = vld [vmem:[%s7290_s2 + $0x44] ss:$16 sps:$4 sm:$0xff]   ;;  %v4806_v22 = vld [vmem:[%s7290_s2 + $0x40] ss:$16 sps:$4 sm:$0xff]  }
   0xc   :  { %1340 = vmatpush1.bf16.msra.mxu1 %v4789_v11  ;;  %1300 = vmatprep.subr.bf16.mxu0 %v4790_v12  ;;  %v4804_v21 = vld [vmem:[%s7290_s2 + $0x244] ss:$16 sps:$4 sm:$0xff]   ;;  %v4807_v23 = vld [vmem:[%s7290_s2 + $0x240] ss:$16 sps:$4 sm:$0xff]   ;;  %v42_v12 = vld [vmem:[%s7288_s0 + $0x8] sm:$0x3f] }
   0xd   :  { %1341 = vmatprep.subr.bf16.mxu1 %v4792_v13  ;;  %v4808_v24 = vld [vmem:[%s7290_s2 + $0x24] ss:$16 sps:$4 sm:$0xff]   ;;  %v4812_v26 = vld [vmem:[%s7290_s2 + $0x20] ss:$16 sps:$4 sm:$0xff]   ;;  %v5865_v13 = vrot.slane %v42_v12, %v5794_v49 }
   0xe   :  { %v4810_v25 = vld [vmem:[%s7290_s2 + $0x224] ss:$16 sps:$4 sm:$0xff]   ;;  %v4813_v27 = vld [vmem:[%s7290_s2 + $0x220] ss:$16 sps:$4 sm:$0xff]  }
   0xf   :  { %1301 = vmatpush1.bf16.msra.mxu0 %v4794_v14  ;;  %v4814_v28 = vld [vmem:[%s7290_s2 + $0x4] ss:$16 sps:$4 sm:$0xff]   ;;  %v4818_v30 = vld [vmem:[%s7290_s2] ss:$16 sps:$4 sm:$0xff]  }
  0x10   :  { %1342 = vmatpush1.bf16.msra.mxu1 %v4795_v15  ;;  %1302 = vmatprep.subr.bf16.mxu0 %v4796_v16  ;;  %v4816_v29 = vld [vmem:[%s7290_s2 + $0x204] ss:$16 sps:$4 sm:$0xff]   ;;  %v4819_v31 = vld [vmem:[%s7290_s2 + $0x200] ss:$16 sps:$4 sm:$0xff]  }
  0x11   :  { %1343 = vmatprep.subr.bf16.mxu1 %v4798_v17  ;;  %v4820_v32 = vld [vmem:[%s7290_s2 + $0x1e4] ss:$16 sps:$4 sm:$0xff]   ;;  %v4824_v34 = vld [vmem:[%s7290_s2 + $0x1e0] ss:$16 sps:$4 sm:$0xff]  }
  0x12   :  { %v4822_v33 = vld [vmem:[%s7290_s2 + $0x3e4] ss:$16 sps:$4 sm:$0xff]   ;;  %v4825_v35 = vld [vmem:[%s7290_s2 + $0x3e0] ss:$16 sps:$4 sm:$0xff]  }
  0x13   :  { %1303 = vmatpush1.bf16.msra.mxu0 %v4800_v18  ;;  %v4826_v39 = vld [vmem:[%s7290_s2 + $0x1c4] ss:$16 sps:$4 sm:$0xff]   ;;  %v4830_v41 = vld [vmem:[%s7290_s2 + $0x1c0] ss:$16 sps:$4 sm:$0xff]   ;;  %v77_v18 = vcombine.high %v5865_v13, %v5865_v13 }
  0x14   :  { %1344 = vmatpush1.bf16.msra.mxu1 %v4801_v19  ;;  %1304 = vmatprep.subr.bf16.mxu0 %v4802_v20  ;;  %v4828_v40 = vld [vmem:[%s7290_s2 + $0x3c4] ss:$16 sps:$4 sm:$0xff]   ;;  %v4831_v44 = vld [vmem:[%s7290_s2 + $0x3c0] ss:$16 sps:$4 sm:$0xff]  }
  0x15   :  { %1345 = vmatprep.subr.bf16.mxu1 %v4804_v21  ;;  %v4832_v45 = vld [vmem:[%s7290_s2 + $0x1a4] ss:$16 sps:$4 sm:$0xff]   ;;  %v4836_v47 = vld [vmem:[%s7290_s2 + $0x1a0] ss:$16 sps:$4 sm:$0xff]   ;;  %v62_v21 = vcombine.high %v42_v12, %v42_v12  ;;  %v4947_v12 = vld [vmem:[%s7290_s2 + $0x18c] ss:$16 sps:$4 sm:$0xff]  }
  0x16   :  { %v4834_v46 = vld [vmem:[%s7290_s2 + $0x3a4] ss:$16 sps:$4 sm:$0xff]   ;;  %v4837_v48 = vld [vmem:[%s7290_s2 + $0x3a0] ss:$16 sps:$4 sm:$0xff]  }
  0x17   :  { %1305 = vmatpush1.bf16.msra.mxu0 %v4806_v22  ;;  %v4838_v50 = vld [vmem:[%s7290_s2 + $0x184] ss:$16 sps:$4 sm:$0xff]   ;;  %v4842_v53 = vld [vmem:[%s7290_s2 + $0x180] ss:$16 sps:$4 sm:$0xff]  }
  0x18   :  { %1346 = vmatpush1.bf16.msra.mxu1 %v4807_v23  ;;  %1306 = vmatprep.subr.bf16.mxu0 %v4808_v24  ;;  %v4840_v51 = vld [vmem:[%s7290_s2 + $0x384] ss:$16 sps:$4 sm:$0xff]   ;;  %v4843_v56 = vld [vmem:[%s7290_s2 + $0x380] ss:$16 sps:$4 sm:$0xff]  }
  0x19   :  { %1347 = vmatprep.subr.bf16.mxu1 %v4810_v25  ;;  %v41_v52 = vld [vmem:[%s7288_s0] sm:$0xff]  ;;  %v4880_v25 = vld [vmem:[%s7290_s2 + $0xec] ss:$16 sps:$4 sm:$0xff]  }
  0x1a   :  { %v52_v54 = vrot.slane %v41_v52, %v5794_v49  ;;  %v45_v55 = vcombine.high %v41_v52, %v41_v52  ;;  %v4844_v57 = vld [vmem:[%s7290_s2 + $0x164] ss:$16 sps:$4 sm:$0xff]   ;;  %v4848_v61 = vld [vmem:[%s7290_s2 + $0x160] ss:$16 sps:$4 sm:$0xff]  }
  0x1b   :  { %1307 = vmatpush1.bf16.msra.mxu0 %v4812_v26  ;;  %v4846_v58 = vld [vmem:[%s7290_s2 + $0x364] ss:$16 sps:$4 sm:$0xff]   ;;  %v4849_v0 = vld [vmem:[%s7290_s2 + $0x360] ss:$16 sps:$4 sm:$0xff]   ;;  %v5897_v26 = vpack.c.bf16 %v77_v18, %v77_v18 }
  0x1c   :  { %1348 = vmatpush1.bf16.msra.mxu1 %v4813_v27  ;;  %1308 = vmatprep.subr.bf16.mxu0 %v4814_v28  ;;  %v60_v59 = vcombine.high %v52_v54, %v52_v54  ;;  %v59_v60 = vrot.slane %v45_v55, %v5794_v49  ;;  %v4850_v1 = vld [vmem:[%s7290_s2 + $0x144] ss:$16 sps:$4 sm:$0xff]   ;;  %v4854_v4 = vld [vmem:[%s7290_s2 + $0x140] ss:$16 sps:$4 sm:$0xff]   ;;  %v5881_v19 = vpack.c.bf16 %v52_v54, %v52_v54  ;;  %v4917_v55 = vld [vmem:[%s7290_s2 + $0x2c] ss:$16 sps:$4 sm:$0xff]  }
  0x1d   :  { %1349 = vmatprep.subr.bf16.mxu1 %v4816_v29  ;;  %v4852_v2 = vld [vmem:[%s7290_s2 + $0x344] ss:$16 sps:$4 sm:$0xff]   ;;  %v4855_v5 = vld [vmem:[%s7290_s2 + $0x340] ss:$16 sps:$4 sm:$0xff]   ;;  %v76_v27 = vrot.slane %v62_v21, %v5794_v49  ;;  %v5589_v29 = vmov 0  }
  0x1e   :  { %v5822_v62 = vpack.c.bf16 %v60_v59, %v60_v59  ;;  %v61_v63 = vcombine.high %v59_v60, %v59_v60  ;;  %v4856_v6 = vld [vmem:[%s7290_s2 + $0x124] ss:$16 sps:$4 sm:$0xff]   ;;  %v4860_v8 = vld [vmem:[%s7290_s2 + $0x120] ss:$16 sps:$4 sm:$0xff]   ;;  %v5883_v20 = vpack.c.bf16 %v59_v60, %v59_v60  ;;  %v4903_v49 = vld [vmem:[%s7290_s2 + $0x68] ss:$16 sps:$4 sm:$0xff]  }
  0x1f   :  { %1309 = vmatpush1.bf16.msra.mxu0 %v4818_v30  ;;  %v4858_v7 = vld [vmem:[%s7290_s2 + $0x324] ss:$16 sps:$4 sm:$0xff]   ;;  %v4861_v9 = vld [vmem:[%s7290_s2 + $0x320] ss:$16 sps:$4 sm:$0xff]   ;;  %v4923_v59 = vld [vmem:[%s7290_s2 + $0xc] ss:$16 sps:$4 sm:$0xff]  }
  0x20   :  { %1350 = vmatpush1.bf16.msra.mxu1 %v4819_v31  ;;  %1310 = vmatprep.subr.bf16.mxu0 %v4820_v32  ;;  %v5833_v3 = vpack.c.bf16 %v61_v63, %v61_v63  ;;  %v4862_v10 = vld [vmem:[%s7290_s2 + $0x104] ss:$16 sps:$4 sm:$0xff]   ;;  %v4866_v14 = vld [vmem:[%s7290_s2 + $0x100] ss:$16 sps:$4 sm:$0xff]   ;;  %v5910_v31 = vpack.c.bf16 %v76_v27, %v76_v27  ;;  %v4878_v32 = vld [vmem:[%s7290_s2 + $0xe8] ss:$16 sps:$4 sm:$0xff]  }
  0x21   :  { %1351 = vmatprep.subr.bf16.mxu1 %v4822_v33  ;;  %1326 = vmatprep.mubr.bf16.mxu0 %v5822_v62  ;;  %v4864_v11 = vld [vmem:[%s7290_s2 + $0x304] ss:$16 sps:$4 sm:$0xff]   ;;  %v4867_v15 = vld [vmem:[%s7290_s2 + $0x300] ss:$16 sps:$4 sm:$0xff]   ;;  %v4929_v63 = vld [vmem:[%s7290_s2 + $0x1ec] ss:$16 sps:$4 sm:$0xff]  }
  0x22   :  { %1367 = vmatprep.mubr.bf16.mxu1 %v5833_v3  ;;  %v4871_v16 = vld [vmem:[%s7290_s2 + $0x4e4] ss:$16 sps:$4 sm:$0xff]   ;;  %v4869_v22 = vld [vmem:[%s7290_s2 + $0x4e0] ss:$16 sps:$4 sm:$0xff]   ;;  %v4951_v21 = vld [vmem:[%s7290_s2 + $0x168] ss:$16 sps:$4 sm:$0xff]  }
  0x23   :  { %1311 = vmatpush2.bf16.msra.mxu0 %v4824_v34  ;;  %v4874_v17 = vld [vmem:[%s7290_s2 + $0x604] ss:$16 sps:$4 sm:$0xff]   ;;  %v4872_v23 = vld [vmem:[%s7290_s2 + $0x600] ss:$16 sps:$4 sm:$0xff]   ;;  %v4887_v34 = vld [vmem:[%s7290_s2 + $0xcc] ss:$16 sps:$4 sm:$0xff]  }
  0x24   :  { %1352 = vmatpush2.bf16.msra.mxu1 %v4825_v35  ;;  %1312 = vmatprep.subr.bf16.mxu0 %v4826_v39  ;;  %v4877_v24 = vld [vmem:[%s7290_s2 + $0x4c4] ss:$16 sps:$4 sm:$0xff]   ;;  %v4875_v28 = vld [vmem:[%s7290_s2 + $0x4c0] ss:$16 sps:$4 sm:$0xff]  }
  0x25   :  { %1353 = vmatprep.subr.bf16.mxu1 %v4828_v40  ;;  %v4883_v30 = vld [vmem:[%s7290_s2 + $0x4a4] ss:$16 sps:$4 sm:$0xff]   ;;  %v4881_v33 = vld [vmem:[%s7290_s2 + $0x4a0] ss:$16 sps:$4 sm:$0xff]   ;;  %v4891_v40 = vld [vmem:[%s7290_s2 + $0xa8] ss:$16 sps:$4 sm:$0xff]  }
  0x26   :  { %v4890_v35 = vld [vmem:[%s7290_s2 + $0x484] ss:$16 sps:$4 sm:$0xff]   ;;  %v4888_v37 = vld [vmem:[%s7290_s2 + $0x480] ss:$16 sps:$4 sm:$0xff]  }
  0x27   :  { %1313 = vmatpush2.bf16.msra.mxu0 %v4830_v41  ;;  %v4896_v39 = vld [vmem:[%s7290_s2 + $0x464] ss:$16 sps:$4 sm:$0xff]   ;;  %v4894_v41 = vld [vmem:[%s7290_s2 + $0x460] ss:$16 sps:$4 sm:$0xff]  }
  0x28   :  { %1354 = vmatpush2.bf16.msra.mxu1 %v4831_v44  ;;  %1314 = vmatprep.subr.bf16.mxu0 %v4832_v45  ;;  %v4902_v44 = vld [vmem:[%s7290_s2 + $0x444] ss:$16 sps:$4 sm:$0xff]   ;;  %v4897_v45 = vld [vmem:[%s7290_s2 + $0x88] ss:$16 sps:$4 sm:$0xff]   ;;  %v4912_v54 = vld [vmem:[%s7290_s2 + $0x400] ss:$16 sps:$4 sm:$0xff]  }
  0x29   :  { %1355 = vmatprep.subr.bf16.mxu1 %v4834_v46  ;;  %v4900_v46 = vld [vmem:[%s7290_s2 + $0x440] ss:$16 sps:$4 sm:$0xff]   ;;  %v4914_v52 = vld [vmem:[%s7290_s2 + $0x404] ss:$16 sps:$4 sm:$0xff]  }
  0x2a   :  { %v4926_v60 = vld [vmem:[%s7290_s2 + $0x5c4] ss:$16 sps:$4 sm:$0xff]   ;;  %v4960_v27 = vld [vmem:[%s7290_s2 + $0x500] ss:$16 sps:$4 sm:$0xff]  }
  0x2b   :  { %1315 = vmatpush2.bf16.msra.mxu0 %v4836_v47  ;;  %v4905_v47 = vld [vmem:[%s7290_s2 + $0x6c] ss:$16 sps:$4 sm:$0xff]   ;;  %v4956_v18 = vld [vmem:[%s7290_s2 + $0x524] ss:$16 sps:$4 sm:$0xff]  }
  0x2c   :  { %1356 = vmatpush2.bf16.msra.mxu1 %v4837_v48  ;;  %1316 = vmatprep.subr.bf16.mxu0 %v4838_v50  ;;  %v4908_v48 = vld [vmem:[%s7290_s2 + $0x424] ss:$16 sps:$4 sm:$0xff]   ;;  %v4906_v50 = vld [vmem:[%s7290_s2 + $0x420] ss:$16 sps:$4 sm:$0xff]  }
  0x2d   :  { %1357 = vmatprep.subr.bf16.mxu1 %v4840_v51  ;;  %v4911_v51 = vld [vmem:[%s7290_s2 + $0x4c] ss:$16 sps:$4 sm:$0xff]  }
  0x2f   :  { %1317 = vmatpush2.bf16.msra.mxu0 %v4842_v53  ;;  %v4909_v53 = vld [vmem:[%s7290_s2 + $0x48] ss:$16 sps:$4 sm:$0xff]  }
  0x30   :  { %1358 = vmatpush2.bf16.msra.mxu1 %v4843_v56  ;;  %1318 = vmatprep.subr.bf16.mxu0 %v4844_v57  ;;  %v4920_v56 = vld [vmem:[%s7290_s2 + $0x5e4] ss:$16 sps:$4 sm:$0xff]   ;;  %v4915_v57 = vld [vmem:[%s7290_s2 + $0x28] ss:$16 sps:$4 sm:$0xff]  }
  0x31   :  { %1359 = vmatprep.subr.bf16.mxu1 %v4846_v58  ;;  %v4918_v58 = vld [vmem:[%s7290_s2 + $0x5e0] ss:$16 sps:$4 sm:$0xff]  }
  0x33   :  { %1319 = vmatpush2.bf16.msra.mxu0 %v4848_v61  ;;  %v4921_v61 = vld [vmem:[%s7290_s2 + $0x8] ss:$16 sps:$4 sm:$0xff]  }
  0x34   :  { %1360 = vmatpush2.bf16.msra.mxu1 %v4849_v0  ;;  %1320 = vmatprep.subr.bf16.mxu0 %v4850_v1  ;;  %v4932_v0 = vld [vmem:[%s7290_s2 + $0x5a4] ss:$16 sps:$4 sm:$0xff]   ;;  %v4927_v1 = vld [vmem:[%s7290_s2 + $0x1e8] ss:$16 sps:$4 sm:$0xff]  }
  0x35   :  { %1361 = vmatprep.subr.bf16.mxu1 %v4852_v2  ;;  %v4930_v2 = vld [vmem:[%s7290_s2 + $0x5a0] ss:$16 sps:$4 sm:$0xff]  }
  0x37   :  { %1321 = vmatpush2.bf16.msra.mxu0 %v4854_v4  ;;  %v4935_v4 = vld [vmem:[%s7290_s2 + $0x1cc] ss:$16 sps:$4 sm:$0xff]  }
  0x38   :  { %1362 = vmatpush2.bf16.msra.mxu1 %v4855_v5  ;;  %1322 = vmatprep.subr.bf16.mxu0 %v4856_v6  ;;  %v4938_v5 = vld [vmem:[%s7290_s2 + $0x584] ss:$16 sps:$4 sm:$0xff]   ;;  %v4933_v6 = vld [vmem:[%s7290_s2 + $0x1c8] ss:$16 sps:$4 sm:$0xff]  }
  0x39   :  { %1363 = vmatprep.subr.bf16.mxu1 %v4858_v7  ;;  %v4936_v7 = vld [vmem:[%s7290_s2 + $0x580] ss:$16 sps:$4 sm:$0xff]  }
  0x3b   :  { %1323 = vmatpush2.bf16.msra.mxu0 %v4860_v8  ;;  %v4941_v8 = vld [vmem:[%s7290_s2 + $0x1ac] ss:$16 sps:$4 sm:$0xff]  }
  0x3c   :  { %1364 = vmatpush2.bf16.msra.mxu1 %v4861_v9  ;;  %1324 = vmatprep.subr.bf16.mxu0 %v4862_v10  ;;  %v4944_v9 = vld [vmem:[%s7290_s2 + $0x564] ss:$16 sps:$4 sm:$0xff]   ;;  %v4939_v10 = vld [vmem:[%s7290_s2 + $0x1a8] ss:$16 sps:$4 sm:$0xff]  }
  0x3d   :  { %1365 = vmatprep.subr.bf16.mxu1 %v4864_v11  ;;  %v4942_v11 = vld [vmem:[%s7290_s2 + $0x560] ss:$16 sps:$4 sm:$0xff]  }
  0x3f   :  { %1325 = vmatpush2.bf16.msra.mxu0 %v4866_v14  ;;  %v4950_v14 = vld [vmem:[%s7290_s2 + $0x544] ss:$16 sps:$4 sm:$0xff]  }
  0x40   :  { %1366 = vmatpush2.bf16.msra.mxu1 %v4867_v15  ;;  %1376 = vmatprep.subr.bf16.mxu0 %v4871_v16  ;;  %v4945_v15 = vld [vmem:[%s7290_s2 + $0x188] ss:$16 sps:$4 sm:$0xff]   ;;  %v4948_v16 = vld [vmem:[%s7290_s2 + $0x540] ss:$16 sps:$4 sm:$0xff]  }
  0x41   :  { %1431 = vmatprep.subr.bf16.mxu1 %v4874_v17  ;;  %v4953_v17 = vld [vmem:[%s7290_s2 + $0x16c] ss:$16 sps:$4 sm:$0xff]  }
  0x42   :  { %1327 = vmatmul.mubr.bf16.vlgmr.msra.gmra.mxu0 %v5881_v19 }
  0x43   :  { %1368 = vmatmul.mubr.bf16.vlgmr.msra.gmra.mxu1 %v5883_v20  ;;  %1377 = vmatpush1.bf16.msra.mxu0 %v4869_v22  ;;  %v4954_v22 = vld [vmem:[%s7290_s2 + $0x520] ss:$16 sps:$4 sm:$0xff]  }
  0x44   :  { %1432 = vmatpush1.bf16.msra.mxu1 %v4872_v23  ;;  %1378 = vmatprep.subr.bf16.mxu0 %v4877_v24  ;;  %v4959_v23 = vld [vmem:[%s7290_s2 + $0x14c] ss:$16 sps:$4 sm:$0xff]   ;;  %v4962_v24 = vld [vmem:[%s7290_s2 + $0x504] ss:$16 sps:$4 sm:$0xff]  }
  0x45   :  { %1449 = vmatprep.mubr.bf16.mxu1 %v5589_v29  ;;  %1458 = vmatprep.subr.bf16.mxu1 %v4880_v25  ;;  %v4957_v25 = vld [vmem:[%s7290_s2 + $0x148] ss:$16 sps:$4 sm:$0xff]  }
  0x46   :  { %1408 = vmatprep.mubr.bf16.mxu0 %v5897_v26 }
  0x47   :  { %1379 = vmatpush1.bf16.msra.mxu0 %v4875_v28  ;;  %v4965_v28 = vld [vmem:[%s7290_s2 + $0x12c] ss:$16 sps:$4 sm:$0xff]  }
  0x48   :  { %1380 = vmatprep.subr.bf16.mxu0 %v4883_v30  ;;  %v4968_v30 = vld [vmem:[%s7290_s2 + $0x2ec] ss:$16 sps:$4 sm:$0xff]  }
  0x4b   :  { %4410 = vmatmul.mubr.msk.bf16.vlgmr.msra.gmra.mxu1 %vm1290_vm0, %v5910_v31  ;;  %1381 = vmatpush1.bf16.msra.mxu0 %v4881_v33  ;;  %v4963_v33 = vld [vmem:[%s7290_s2 + $0x128] ss:$16 sps:$4 sm:$0xff]  }
  0x4c   :  { %1459 = vmatpush1.bf16.msra.mxu1 %v4878_v32  ;;  %1382 = vmatprep.subr.bf16.mxu0 %v4890_v35  ;;  %v6085_v32 = vpack.c.bf16 %v5865_v13, %v5865_v13  ;;  %v4971_v35 = vld [vmem:[%s7290_s2 + $0x10c] ss:$16 sps:$4 sm:$0xff]  }
  0x4d   :  { %1460 = vmatprep.subr.bf16.mxu1 %v4887_v34  ;;  %1490 = vmatprep.mubr.bf16.mxu1 %v5822_v62  ;;  %v4924_v62 = vld [vmem:[%s7290_s2 + $0x5c0] ss:$16 sps:$4 sm:$0xff]   ;;  %v4966_v34 = vld [vmem:[%s7290_s2 + $0x2e8] ss:$16 sps:$4 sm:$0xff]   ;;  %v4974_v13 = vld [vmem:[%s7290_s2 + $0x2cc] ss:$16 sps:$4 sm:$0xff]  }
  0x4f   :  { %1383 = vmatpush1.bf16.msra.mxu0 %v4888_v37  ;;  %v4972_v37 = vld [vmem:[%s7290_s2 + $0x2c8] ss:$16 sps:$4 sm:$0xff]  }
  0x50   :  { %1461 = vmatpush1.bf16.msra.mxu1 %v4885_v36  ;;  %1384 = vmatprep.subr.bf16.mxu0 %v4896_v39  ;;  %v4969_v36 = vld [vmem:[%s7290_s2 + $0x108] ss:$16 sps:$4 sm:$0xff]   ;;  %v4980_v39 = vld [vmem:[%s7290_s2 + $0x2ac] ss:$16 sps:$4 sm:$0xff]  }
  0x51   :  { %1462 = vmatprep.subr.bf16.mxu1 %v4893_v38  ;;  %v4977_v38 = vld [vmem:[%s7290_s2 + $0x4ec] ss:$16 sps:$4 sm:$0xff]  }
  0x53   :  { %1385 = vmatpush1.bf16.msra.mxu0 %v4894_v41  ;;  %v4978_v41 = vld [vmem:[%s7290_s2 + $0x2a8] ss:$16 sps:$4 sm:$0xff]  }
  0x54   :  { %1463 = vmatpush1.bf16.msra.mxu1 %v4891_v40  ;;  %1386 = vmatprep.subr.bf16.mxu0 %v4902_v44  ;;  %v4975_v40 = vld [vmem:[%s7290_s2 + $0x4e8] ss:$16 sps:$4 sm:$0xff]   ;;  %v4986_v44 = vld [vmem:[%s7290_s2 + $0x28c] ss:$16 sps:$4 sm:$0xff]  }
  0x55   :  { %1464 = vmatprep.subr.bf16.mxu1 %v4899_v42  ;;  %v4983_v42 = vld [vmem:[%s7290_s2 + $0x4cc] ss:$16 sps:$4 sm:$0xff]  }
  0x57   :  { %1387 = vmatpush1.bf16.msra.mxu0 %v4900_v46  ;;  %v4989_v46 = vld [vmem:[%s7290_s2 + $0x4ac] ss:$16 sps:$4 sm:$0xff]  }
  0x58   :  { %1465 = vmatpush1.bf16.msra.mxu1 %v4897_v45  ;;  %1388 = vmatprep.subr.bf16.mxu0 %v4908_v48  ;;  %v4981_v45 = vld [vmem:[%s7290_s2 + $0x4c8] ss:$16 sps:$4 sm:$0xff]  }
  0x59   :  { %1466 = vmatprep.subr.bf16.mxu1 %v4905_v47  ;;  %v4992_v47 = vld [vmem:[%s7290_s2 + $0x26c] ss:$16 sps:$4 sm:$0xff]   ;;  %v4987_v48 = vld [vmem:[%s7290_s2 + $0x4a8] ss:$16 sps:$4 sm:$0xff]  }
  0x5b   :  { %1389 = vmatpush1.bf16.msra.mxu0 %v4906_v50  ;;  %v4998_v50 = vld [vmem:[%s7290_s2 + $0x24c] ss:$16 sps:$4 sm:$0xff]  }
  0x5c   :  { %1467 = vmatpush1.bf16.msra.mxu1 %v4903_v49  ;;  %1390 = vmatprep.subr.bf16.mxu0 %v4914_v52  ;;  %v4995_v49 = vld [vmem:[%s7290_s2 + $0x48c] ss:$16 sps:$4 sm:$0xff]  }
  0x5d   :  { %1468 = vmatprep.subr.bf16.mxu1 %v4911_v51  ;;  %v4996_v51 = vld [vmem:[%s7290_s2 + $0x248] ss:$16 sps:$4 sm:$0xff]   ;;  %v5001_v52 = vld [vmem:[%s7290_s2 + $0x46c] ss:$16 sps:$4 sm:$0xff]  }
  0x5f   :  { %1391 = vmatpush1.bf16.msra.mxu0 %v4912_v54  ;;  %v4999_v54 = vld [vmem:[%s7290_s2 + $0x468] ss:$16 sps:$4 sm:$0xff]  }
  0x60   :  { %1469 = vmatpush1.bf16.msra.mxu1 %v4909_v53  ;;  %1392 = vmatprep.subr.bf16.mxu0 %v4920_v56  ;;  %v5004_v53 = vld [vmem:[%s7290_s2 + $0x22c] ss:$16 sps:$4 sm:$0xff]  }
  0x61   :  { %1470 = vmatprep.subr.bf16.mxu1 %v4917_v55  ;;  %v5002_v55 = vld [vmem:[%s7290_s2 + $0x228] ss:$16 sps:$4 sm:$0xff]   ;;  %v5007_v56 = vld [vmem:[%s7290_s2 + $0x44c] ss:$16 sps:$4 sm:$0xff]  }
  0x63   :  { %1393 = vmatpush2.bf16.msra.mxu0 %v4918_v58  ;;  %v5005_v58 = vld [vmem:[%s7290_s2 + $0x448] ss:$16 sps:$4 sm:$0xff]  }
  0x64   :  { %1471 = vmatpush1.bf16.msra.mxu1 %v4915_v57  ;;  %1394 = vmatprep.subr.bf16.mxu0 %v4926_v60  ;;  %v5010_v57 = vld [vmem:[%s7290_s2 + $0x20c] ss:$16 sps:$4 sm:$0xff]  }
  0x65   :  { %1472 = vmatprep.subr.bf16.mxu1 %v4923_v59  ;;  %v5008_v59 = vld [vmem:[%s7290_s2 + $0x208] ss:$16 sps:$4 sm:$0xff]   ;;  %v5013_v60 = vld [vmem:[%s7290_s2 + $0x42c] ss:$16 sps:$4 sm:$0xff]  }
  0x67   :  { %1395 = vmatpush2.bf16.msra.mxu0 %v4924_v62  ;;  %v5011_v62 = vld [vmem:[%s7290_s2 + $0x428] ss:$16 sps:$4 sm:$0xff]  }
  0x68   :  { %1473 = vmatpush1.bf16.msra.mxu1 %v4921_v61  ;;  %1396 = vmatprep.subr.bf16.mxu0 %v4932_v0  ;;  %v5016_v61 = vld [vmem:[%s7290_s2 + $0x3ec] ss:$16 sps:$4 sm:$0xff]  }
  0x69   :  { %1474 = vmatprep.subr.bf16.mxu1 %v4929_v63  ;;  %v5014_v63 = vld [vmem:[%s7290_s2 + $0x3e8] ss:$16 sps:$4 sm:$0xff]   ;;  %v5019_v0 = vld [vmem:[%s7290_s2 + $0x40c] ss:$16 sps:$4 sm:$0xff]  }
  0x6b   :  { %1397 = vmatpush2.bf16.msra.mxu0 %v4930_v2  ;;  %v5017_v2 = vld [vmem:[%s7290_s2 + $0x408] ss:$16 sps:$4 sm:$0xff]  }
  0x6c   :  { %1475 = vmatpush2.bf16.msra.mxu1 %v4927_v1  ;;  %1398 = vmatprep.subr.bf16.mxu0 %v4938_v5  ;;  %v5022_v1 = vld [vmem:[%s7290_s2 + $0x3cc] ss:$16 sps:$4 sm:$0xff]  }
  0x6d   :  { %1476 = vmatprep.subr.bf16.mxu1 %v4935_v4  ;;  %v5020_v4 = vld [vmem:[%s7290_s2 + $0x3c8] ss:$16 sps:$4 sm:$0xff]   ;;  %v5025_v5 = vld [vmem:[%s7290_s2 + $0x5ec] ss:$16 sps:$4 sm:$0xff]  }
  0x6f   :  { %1399 = vmatpush2.bf16.msra.mxu0 %v4936_v7  ;;  %v5023_v7 = vld [vmem:[%s7290_s2 + $0x5e8] ss:$16 sps:$4 sm:$0xff]  }
  0x70   :  { %1477 = vmatpush2.bf16.msra.mxu1 %v4933_v6  ;;  %1400 = vmatprep.subr.bf16.mxu0 %v4944_v9  ;;  %v5028_v6 = vld [vmem:[%s7290_s2 + $0x3ac] ss:$16 sps:$4 sm:$0xff]  }
  0x71   :  { %1478 = vmatprep.subr.bf16.mxu1 %v4941_v8  ;;  %v5026_v8 = vld [vmem:[%s7290_s2 + $0x3a8] ss:$16 sps:$4 sm:$0xff]   ;;  %v5031_v9 = vld [vmem:[%s7290_s2 + $0x5cc] ss:$16 sps:$4 sm:$0xff]  }
  0x73   :  { %1401 = vmatpush2.bf16.msra.mxu0 %v4942_v11  ;;  %v5029_v11 = vld [vmem:[%s7290_s2 + $0x5c8] ss:$16 sps:$4 sm:$0xff]  }
  0x74   :  { %1479 = vmatpush2.bf16.msra.mxu1 %v4939_v10  ;;  %1402 = vmatprep.subr.bf16.mxu0 %v4950_v14  ;;  %v5034_v10 = vld [vmem:[%s7290_s2 + $0x38c] ss:$16 sps:$4 sm:$0xff]  }
  0x75   :  { %1480 = vmatprep.subr.bf16.mxu1 %v4947_v12  ;;  %v5032_v12 = vld [vmem:[%s7290_s2 + $0x388] ss:$16 sps:$4 sm:$0xff]   ;;  %v5037_v14 = vld [vmem:[%s7290_s2 + $0x5ac] ss:$16 sps:$4 sm:$0xff]  }
  0x77   :  { %1403 = vmatpush2.bf16.msra.mxu0 %v4948_v16  ;;  %v5035_v16 = vld [vmem:[%s7290_s2 + $0x5a8] ss:$16 sps:$4 sm:$0xff]  }
  0x78   :  { %1481 = vmatpush2.bf16.msra.mxu1 %v4945_v15  ;;  %1404 = vmatprep.subr.bf16.mxu0 %v4956_v18  ;;  %v5040_v15 = vld [vmem:[%s7290_s2 + $0x36c] ss:$16 sps:$4 sm:$0xff]  }
  0x79   :  { %1482 = vmatprep.subr.bf16.mxu1 %v4953_v17  ;;  %v5038_v17 = vld [vmem:[%s7290_s2 + $0x368] ss:$16 sps:$4 sm:$0xff]   ;;  %v5043_v18 = vld [vmem:[%s7290_s2 + $0x58c] ss:$16 sps:$4 sm:$0xff]  }
  0x7b   :  { %1405 = vmatpush2.bf16.msra.mxu0 %v4954_v22  ;;  %v5041_v22 = vld [vmem:[%s7290_s2 + $0x588] ss:$16 sps:$4 sm:$0xff]  }
  0x7c   :  { %1483 = vmatpush2.bf16.msra.mxu1 %v4951_v21  ;;  %1406 = vmatprep.subr.bf16.mxu0 %v4962_v24  ;;  %v5046_v21 = vld [vmem:[%s7290_s2 + $0x34c] ss:$16 sps:$4 sm:$0xff]  }
  0x7d   :  { %1484 = vmatprep.subr.bf16.mxu1 %v4959_v23  ;;  %v5044_v23 = vld [vmem:[%s7290_s2 + $0x348] ss:$16 sps:$4 sm:$0xff]   ;;  %v5049_v24 = vld [vmem:[%s7290_s2 + $0x56c] ss:$16 sps:$4 sm:$0xff]  }
  0x7f   :  { %1407 = vmatpush2.bf16.msra.mxu0 %v4960_v27  ;;  %v5047_v27 = vld [vmem:[%s7290_s2 + $0x568] ss:$16 sps:$4 sm:$0xff]  }
  0x80   :  { %1485 = vmatpush2.bf16.msra.mxu1 %v4957_v25  ;;  %1499 = vmatprep.subr.bf16.mxu0 %v4968_v30  ;;  %v5052_v25 = vld [vmem:[%s7290_s2 + $0x32c] ss:$16 sps:$4 sm:$0xff]  }
  0x81   :  { %1486 = vmatprep.subr.bf16.mxu1 %v4965_v28  ;;  %v5050_v28 = vld [vmem:[%s7290_s2 + $0x328] ss:$16 sps:$4 sm:$0xff]   ;;  %v5055_v30 = vld [vmem:[%s7290_s2 + $0x54c] ss:$16 sps:$4 sm:$0xff]  }
  0x82   :  { %1409 = vmatmul.mubr.bf16.vlgmr.msra.gmra.mxu0 %v6085_v32 }
  0x83   :  { %1500 = vmatpush1.bf16.msra.mxu0 %v4966_v34  ;;  %1531 = vmatprep.mubr.bf16.mxu0 %v5833_v3  ;;  %v4984_v3 = vld [vmem:[%s7290_s2 + $0x288] ss:$16 sps:$4 sm:$0xff]  }
  0x84   :  { %1487 = vmatpush2.bf16.msra.mxu1 %v4963_v33  ;;  %1501 = vmatprep.subr.bf16.mxu0 %v4974_v13  ;;  %v5058_v33 = vld [vmem:[%s7290_s2 + $0x30c] ss:$16 sps:$4 sm:$0xff]   ;;  %v5053_v34 = vld [vmem:[%s7290_s2 + $0x548] ss:$16 sps:$4 sm:$0xff]  }
  0x85   :  { %1488 = vmatprep.subr.bf16.mxu1 %v4971_v35  ;;  %v5056_v35 = vld [vmem:[%s7290_s2 + $0x308] ss:$16 sps:$4 sm:$0xff]   ;;  %v5061_v13 = vld [vmem:[%s7290_s2 + $0x52c] ss:$16 sps:$4 sm:$0xff]  }
  0x87   :  { %1502 = vmatpush1.bf16.msra.mxu0 %v4972_v37  ;;  %v5059_v37 = vld [vmem:[%s7290_s2 + $0x528] ss:$16 sps:$4 sm:$0xff]  }
  0x88   :  { %1489 = vmatpush2.bf16.msra.mxu1 %v4969_v36  ;;  %1503 = vmatprep.subr.bf16.mxu0 %v4980_v39  ;;  %v5064_v36 = vld [vmem:[%s7290_s2 + $0x60c] ss:$16 sps:$4 sm:$0xff]  }
  0x89   :  { %1540 = vmatprep.subr.bf16.mxu1 %v4977_v38  ;;  %v5062_v38 = vld [vmem:[%s7290_s2 + $0x608] ss:$16 sps:$4 sm:$0xff]   ;;  %v5067_v39 = vld [vmem:[%s7290_s2 + $0x50c] ss:$16 sps:$4 sm:$0xff]  }
  0x8b   :  { %1491 = vmatmul.mubr.bf16.vlgmr.msra.gmra.mxu1 %v5881_v19  ;;  %1504 = vmatpush1.bf16.msra.mxu0 %v4978_v41  ;;  %v4990_v19 = vld [vmem:[%s7290_s2 + $0x268] ss:$16 sps:$4 sm:$0xff]  }
  0x8c   :  { %1541 = vmatpush1.bf16.msra.mxu1 %v4975_v40  ;;  %1505 = vmatprep.subr.bf16.mxu0 %v4986_v44  ;;  %v5070_v40 = vld [vmem:[%s7292_s4 + $0x74] ss:$8 sps:$4 sm:$0xff]   ;;  %v5065_v41 = vld [vmem:[%s7290_s2 + $0x508] ss:$16 sps:$4 sm:$0xff]   ;;  %v5073_v44 = vld [vmem:[%s7292_s4 + $0x64] ss:$8 sps:$4 sm:$0xff]  }
  0x8d   :  { %1542 = vmatprep.subr.bf16.mxu1 %v4983_v42  ;;  %1572 = vmatprep.mubr.bf16.mxu1 %v5897_v26  ;;  %v4993_v26 = vld [vmem:[%s7290_s2 + $0x488] ss:$16 sps:$4 sm:$0xff]  }
  0x8e   :  { %v5068_v42 = vld [vmem:[%s7292_s4 + $0x70] ss:$8 sps:$4 sm:$0xff]  }
  0x8f   :  { %1506 = vmatpush1.bf16.msra.mxu0 %v4984_v3  ;;  %v5074_v3 = vld [vmem:[%s7292_s4 + $0x50] ss:$8 sps:$4 sm:$0xff]  }
  0x90   :  { %1543 = vmatpush1.bf16.msra.mxu1 %v4981_v45  ;;  %1507 = vmatprep.subr.bf16.mxu0 %v4992_v47  ;;  %v5076_v45 = vld [vmem:[%s7292_s4 + $0x54] ss:$8 sps:$4 sm:$0xff]   ;;  %v5121_v47 = vld [vmem:[%s7292_s4 + $0x164] ss:$8 sps:$4 sm:$0xff]  }
  0x91   :  { %1544 = vmatprep.subr.bf16.mxu1 %v4989_v46  ;;  %v5079_v46 = vld [vmem:[%s7292_s4 + $0x44] ss:$8 sps:$4 sm:$0xff]  }
  0x93   :  { %1508 = vmatpush1.bf16.msra.mxu0 %v4990_v19  ;;  %v5119_v19 = vld [vmem:[%s7292_s4 + $0x160] ss:$8 sps:$4 sm:$0xff]  }
  0x94   :  { %1545 = vmatpush1.bf16.msra.mxu1 %v4987_v48  ;;  %1509 = vmatprep.subr.bf16.mxu0 %v4998_v50  ;;  %v5077_v48 = vld [vmem:[%s7292_s4 + $0x40] ss:$8 sps:$4 sm:$0xff]   ;;  %v5124_v50 = vld [vmem:[%s7292_s4 + $0x154] ss:$8 sps:$4 sm:$0xff]  }
  0x95   :  { %1546 = vmatprep.subr.bf16.mxu1 %v4995_v49  ;;  %v5082_v49 = vld [vmem:[%s7292_s4 + $0x34] ss:$8 sps:$4 sm:$0xff]  }
  0x97   :  { %1510 = vmatpush1.bf16.msra.mxu0 %v4996_v51  ;;  %v5085_v51 = vld [vmem:[%s7292_s4 + $0x24] ss:$8 sps:$4 sm:$0xff]  }
  0x98   :  { %1547 = vmatpush1.bf16.msra.mxu1 %v4993_v26  ;;  %1511 = vmatprep.subr.bf16.mxu0 %v5004_v53  ;;  %v5080_v26 = vld [vmem:[%s7292_s4 + $0x30] ss:$8 sps:$4 sm:$0xff]   ;;  %v5127_v53 = vld [vmem:[%s7292_s4 + $0x144] ss:$8 sps:$4 sm:$0xff]  }
  0x99   :  { %1548 = vmatprep.subr.bf16.mxu1 %v5001_v52  ;;  %v5122_v52 = vld [vmem:[%s7292_s4 + $0x150] ss:$8 sps:$4 sm:$0xff]  }
  0x9b   :  { %1512 = vmatpush1.bf16.msra.mxu0 %v5002_v55  ;;  %v5125_v55 = vld [vmem:[%s7292_s4 + $0x140] ss:$8 sps:$4 sm:$0xff]  }
  0x9c   :  { %1549 = vmatpush1.bf16.msra.mxu1 %v4999_v54  ;;  %1513 = vmatprep.subr.bf16.mxu0 %v5010_v57  ;;  %v5083_v54 = vld [vmem:[%s7292_s4 + $0x20] ss:$8 sps:$4 sm:$0xff]   ;;  %v5130_v57 = vld [vmem:[%s7292_s4 + $0x134] ss:$8 sps:$4 sm:$0xff]  }
  0x9d   :  { %1550 = vmatprep.subr.bf16.mxu1 %v5007_v56  ;;  %v5088_v56 = vld [vmem:[%s7292_s4 + $0x14] ss:$8 sps:$4 sm:$0xff]  }
  0x9f   :  { %1514 = vmatpush1.bf16.msra.mxu0 %v5008_v59  ;;  %v5128_v59 = vld [vmem:[%s7292_s4 + $0x130] ss:$8 sps:$4 sm:$0xff]  }
  0xa0   :  { %1551 = vmatpush1.bf16.msra.mxu1 %v5005_v58  ;;  %1515 = vmatprep.subr.bf16.mxu0 %v5016_v61  ;;  %v5086_v58 = vld [vmem:[%s7292_s4 + $0x10] ss:$8 sps:$4 sm:$0xff]   ;;  %v5133_v61 = vld [vmem:[%s7292_s4 + $0x124] ss:$8 sps:$4 sm:$0xff]  }
  0xa1   :  { %1552 = vmatprep.subr.bf16.mxu1 %v5013_v60  ;;  %v5091_v60 = vld [vmem:[%s7292_s4 + $0x4] ss:$8 sps:$4 sm:$0xff]  }
  0xa3   :  { %1516 = vmatpush2.bf16.msra.mxu0 %v5014_v63  ;;  %v5131_v63 = vld [vmem:[%s7292_s4 + $0x120] ss:$8 sps:$4 sm:$0xff]  }
  0xa4   :  { %1553 = vmatpush1.bf16.msra.mxu1 %v5011_v62  ;;  %1517 = vmatprep.subr.bf16.mxu0 %v5022_v1  ;;  %v5089_v62 = vld [vmem:[%s7292_s4] ss:$8 sps:$4 sm:$0xff]   ;;  %v5136_v1 = vld [vmem:[%s7292_s4 + $0x114] ss:$8 sps:$4 sm:$0xff]  }
  0xa5   :  { %1554 = vmatprep.subr.bf16.mxu1 %v5019_v0  ;;  %v5094_v0 = vld [vmem:[%s7292_s4 + $0xf4] ss:$8 sps:$4 sm:$0xff]  }
  0xa7   :  { %1518 = vmatpush2.bf16.msra.mxu0 %v5020_v4  ;;  %v5134_v4 = vld [vmem:[%s7292_s4 + $0x110] ss:$8 sps:$4 sm:$0xff]  }
  0xa8   :  { %1555 = vmatpush1.bf16.msra.mxu1 %v5017_v2  ;;  %1519 = vmatprep.subr.bf16.mxu0 %v5028_v6  ;;  %v5092_v2 = vld [vmem:[%s7292_s4 + $0xf0] ss:$8 sps:$4 sm:$0xff]   ;;  %v5139_v6 = vld [vmem:[%s7292_s4 + $0x104] ss:$8 sps:$4 sm:$0xff]  }
  0xa9   :  { %1556 = vmatprep.subr.bf16.mxu1 %v5025_v5  ;;  %v5097_v5 = vld [vmem:[%s7292_s4 + $0xe4] ss:$8 sps:$4 sm:$0xff]  }
  0xab   :  { %1520 = vmatpush2.bf16.msra.mxu0 %v5026_v8  ;;  %v5137_v8 = vld [vmem:[%s7292_s4 + $0x100] ss:$8 sps:$4 sm:$0xff]  }
  0xac   :  { %1557 = vmatpush2.bf16.msra.mxu1 %v5023_v7  ;;  %1521 = vmatprep.subr.bf16.mxu0 %v5034_v10  ;;  %v5095_v7 = vld [vmem:[%s7292_s4 + $0xe0] ss:$8 sps:$4 sm:$0xff]   ;;  %v5142_v10 = vld [vmem:[%s7292_s4 + $0x1f4] ss:$8 sps:$4 sm:$0xff]  }
  0xad   :  { %1558 = vmatprep.subr.bf16.mxu1 %v5031_v9  ;;  %v5100_v9 = vld [vmem:[%s7292_s4 + $0xd4] ss:$8 sps:$4 sm:$0xff]  }
  0xaf   :  { %1522 = vmatpush2.bf16.msra.mxu0 %v5032_v12  ;;  %v5140_v12 = vld [vmem:[%s7292_s4 + $0x1f0] ss:$8 sps:$4 sm:$0xff]  }
  0xb0   :  { %1559 = vmatpush2.bf16.msra.mxu1 %v5029_v11  ;;  %1523 = vmatprep.subr.bf16.mxu0 %v5040_v15  ;;  %v5098_v11 = vld [vmem:[%s7292_s4 + $0xd0] ss:$8 sps:$4 sm:$0xff]   ;;  %v5145_v15 = vld [vmem:[%s7292_s4 + $0x1e4] ss:$8 sps:$4 sm:$0xff]  }
  0xb1   :  { %1560 = vmatprep.subr.bf16.mxu1 %v5037_v14  ;;  %v5103_v14 = vld [vmem:[%s7292_s4 + $0xc4] ss:$8 sps:$4 sm:$0xff]  }
  0xb3   :  { %1524 = vmatpush2.bf16.msra.mxu0 %v5038_v17  ;;  %v5143_v17 = vld [vmem:[%s7292_s4 + $0x1e0] ss:$8 sps:$4 sm:$0xff]  }
  0xb4   :  { %1561 = vmatpush2.bf16.msra.mxu1 %v5035_v16  ;;  %1525 = vmatprep.subr.bf16.mxu0 %v5046_v21  ;;  %v5101_v16 = vld [vmem:[%s7292_s4 + $0xc0] ss:$8 sps:$4 sm:$0xff]   ;;  %v5148_v21 = vld [vmem:[%s7292_s4 + $0x1d4] ss:$8 sps:$4 sm:$0xff]  }
  0xb5   :  { %1562 = vmatprep.subr.bf16.mxu1 %v5043_v18  ;;  %v5106_v18 = vld [vmem:[%s7292_s4 + $0xb4] ss:$8 sps:$4 sm:$0xff]  }
  0xb7   :  { %1526 = vmatpush2.bf16.msra.mxu0 %v5044_v23  ;;  %v5146_v23 = vld [vmem:[%s7292_s4 + $0x1d0] ss:$8 sps:$4 sm:$0xff]  }
  0xb8   :  { %1563 = vmatpush2.bf16.msra.mxu1 %v5041_v22  ;;  %1527 = vmatprep.subr.bf16.mxu0 %v5052_v25  ;;  %v5104_v22 = vld [vmem:[%s7292_s4 + $0xb0] ss:$8 sps:$4 sm:$0xff]   ;;  %v5151_v25 = vld [vmem:[%s7292_s4 + $0x1c4] ss:$8 sps:$4 sm:$0xff]  }
  0xb9   :  { %1564 = vmatprep.subr.bf16.mxu1 %v5049_v24  ;;  %v5109_v24 = vld [vmem:[%s7292_s4 + $0xa4] ss:$8 sps:$4 sm:$0xff]  }
  0xbb   :  { %1528 = vmatpush2.bf16.msra.mxu0 %v5050_v28  ;;  %v5149_v28 = vld [vmem:[%s7292_s4 + $0x1c0] ss:$8 sps:$4 sm:$0xff]  }
  0xbc   :  { %1565 = vmatpush2.bf16.msra.mxu1 %v5047_v27  ;;  %1529 = vmatprep.subr.bf16.mxu0 %v5058_v33  ;;  %v5107_v27 = vld [vmem:[%s7292_s4 + $0xa0] ss:$8 sps:$4 sm:$0xff]   ;;  %v5110_v33 = vld [vmem:[%s7292_s4 + $0x90] ss:$8 sps:$4 sm:$0xff]  }
  0xbd   :  { %1566 = vmatprep.subr.bf16.mxu1 %v5055_v30  ;;  %v5112_v30 = vld [vmem:[%s7292_s4 + $0x94] ss:$8 sps:$4 sm:$0xff]  }
  0xbf   :  { %1530 = vmatpush2.bf16.msra.mxu0 %v5056_v35 }
  0xc0   :  { %1567 = vmatpush2.bf16.msra.mxu1 %v5053_v34  ;;  %1595 = vmatprep.subr.bf16.mxu0 %v5064_v36  ;;  %v5115_v34 = vld [vmem:[%s7292_s4 + $0x84] ss:$8 sps:$4 sm:$0xff]  }
  0xc1   :  { %1568 = vmatprep.subr.bf16.mxu1 %v5061_v13 }
  0xc2   :  { %1532 = vmatmul.mubr.bf16.vlgmr.msra.gmra.mxu0 %v5883_v20  ;;  %v5071_v20 = vld [vmem:[%s7292_s4 + $0x60] ss:$8 sps:$4 sm:$0xff]  }
  0xc3   :  { %1596 = vmatpush1.bf16.msra.mxu0 %v5062_v38  ;;  %1613 = vmatprep.mubr.bf16.mxu0 %v5589_v29 }
  0xc4   :  { %1569 = vmatpush2.bf16.msra.mxu1 %v5059_v37  ;;  %2026 = vmatprep.subr.bf16.mxu0 %v5070_v40 }
  0xc5   :  { %1570 = vmatprep.subr.bf16.mxu1 %v5067_v39 }
  0xc8   :  { %1571 = vmatpush2.bf16.msra.mxu1 %v5065_v41 }
  0xca   :  { %4411 = vmatmul.mubr.msk.bf16.vlgmr.msra.gmra.mxu0 %vm1290_vm0, %v5910_v31  ;;  %v5116_v31 = vld [vmem:[%s7292_s4 + $0x170] ss:$8 sps:$4 sm:$0xff]  }
  0xcb   :  { %1573 = vmatmul.mubr.bf16.vlgmr.msra.gmra.mxu1 %v6085_v32  ;;  %2027 = vmatpush1.bf16.msra.mxu0 %v5068_v42  ;;  %v5118_v32 = vld [vmem:[%s7292_s4 + $0x174] ss:$8 sps:$4 sm:$0xff]  }
  0xcc   :  { %2028 = vmatprep.subr.bf16.mxu0 %v5073_v44  ;;  %2067 = vmatprep.subr.bf16.mxu1 %v5118_v32 }
  0xcd   :  { %2068 = vmatpush1.bf16.msra.mxu1 %v5116_v31 }
  0xce   :  { %2069 = vmatprep.subr.bf16.mxu1 %v5121_v47 }
  0xcf   :  { %2029 = vmatpush1.bf16.msra.mxu0 %v5071_v20 }
  0xd0   :  { %2030 = vmatprep.subr.bf16.mxu0 %v5076_v45 }
  0xd1   :  { %2070 = vmatpush1.bf16.msra.mxu1 %v5119_v19 }
  0xd2   :  { %2071 = vmatprep.subr.bf16.mxu1 %v5124_v50 }
  0xd3   :  { %2031 = vmatpush1.bf16.msra.mxu0 %v5074_v3 }
  0xd4   :  { %2032 = vmatprep.subr.bf16.mxu0 %v5079_v46 }
  0xd5   :  { %2072 = vmatpush1.bf16.msra.mxu1 %v5122_v52 }
  0xd6   :  { %2073 = vmatprep.subr.bf16.mxu1 %v5127_v53 }
  0xd7   :  { %2033 = vmatpush1.bf16.msra.mxu0 %v5077_v48 }
  0xd8   :  { %2034 = vmatprep.subr.bf16.mxu0 %v5082_v49 }
  0xd9   :  { %2074 = vmatpush1.bf16.msra.mxu1 %v5125_v55 }
  0xda   :  { %2075 = vmatprep.subr.bf16.mxu1 %v5130_v57 }
  0xdb   :  { %2035 = vmatpush1.bf16.msra.mxu0 %v5080_v26 }
  0xdc   :  { %2036 = vmatprep.subr.bf16.mxu0 %v5085_v51 }
  0xdd   :  { %2076 = vmatpush1.bf16.msra.mxu1 %v5128_v59 }
  0xde   :  { %2077 = vmatprep.subr.bf16.mxu1 %v5133_v61 }
  0xdf   :  { %2037 = vmatpush1.bf16.msra.mxu0 %v5083_v54 }
  0xe0   :  { %2038 = vmatprep.subr.bf16.mxu0 %v5088_v56 }
  0xe1   :  { %2078 = vmatpush1.bf16.msra.mxu1 %v5131_v63 }
  0xe2   :  { %2079 = vmatprep.subr.bf16.mxu1 %v5136_v1 }
  0xe3   :  { %2039 = vmatpush1.bf16.msra.mxu0 %v5086_v58 }
  0xe4   :  { %2040 = vmatprep.subr.bf16.mxu0 %v5091_v60 }
  0xe5   :  { %2080 = vmatpush1.bf16.msra.mxu1 %v5134_v4 }
  0xe6   :  { %2081 = vmatprep.subr.bf16.mxu1 %v5139_v6 }
  0xe7   :  { %2041 = vmatpush1.bf16.msra.mxu0 %v5089_v62 }
  0xe8   :  { %2042 = vmatprep.subr.bf16.mxu0 %v5094_v0 }
  0xe9   :  { %2082 = vmatpush1.bf16.msra.mxu1 %v5137_v8 }
  0xea   :  { %2083 = vmatprep.subr.bf16.mxu1 %v5142_v10 }
  0xeb   :  { %2043 = vmatpush2.bf16.msra.mxu0 %v5092_v2 }
  0xec   :  { %2044 = vmatprep.subr.bf16.mxu0 %v5097_v5 }
  0xed   :  { %2084 = vmatpush2.bf16.msra.mxu1 %v5140_v12 }
  0xee   :  { %2085 = vmatprep.subr.bf16.mxu1 %v5145_v15 }
  0xef   :  { %2045 = vmatpush2.bf16.msra.mxu0 %v5095_v7 }
  0xf0   :  { %2046 = vmatprep.subr.bf16.mxu0 %v5100_v9 }
  0xf1   :  { %2086 = vmatpush2.bf16.msra.mxu1 %v5143_v17 }
  0xf2   :  { %2087 = vmatprep.subr.bf16.mxu1 %v5148_v21 }
  0xf3   :  { %2047 = vmatpush2.bf16.msra.mxu0 %v5098_v11 }
  0xf4   :  { %2048 = vmatprep.subr.bf16.mxu0 %v5103_v14 }
  0xf5   :  { %2088 = vmatpush2.bf16.msra.mxu1 %v5146_v23 }
  0xf6   :  { %2089 = vmatprep.subr.bf16.mxu1 %v5151_v25 }
  0xf7   :  { %2049 = vmatpush2.bf16.msra.mxu0 %v5101_v16 }
  0xf8   :  { %2050 = vmatprep.subr.bf16.mxu0 %v5106_v18 }
  0xf9   :  { %2090 = vmatpush2.bf16.msra.mxu1 %v5149_v28 }
  0xfb   :  { %2051 = vmatpush2.bf16.msra.mxu0 %v5104_v22 }
  0xfc   :  { %2052 = vmatprep.subr.bf16.mxu0 %v5109_v24 }
  0xff   :  { %2053 = vmatpush2.bf16.msra.mxu0 %v5107_v27 }
 0x100   :  { %2054 = vmatprep.subr.bf16.mxu0 %v5112_v30 }
 0x101   :  { %19 = vsyncpa [#allocation5], 0  ;;  %v5113_v36 = vld [vmem:[%s7292_s4 + $0x80] ss:$8 sps:$4 sm:$0xff]   ;;  %v5154_v39 = vld [vmem:[%s7292_s4 + $0x1b4] ss:$8 sps:$4 sm:$0xff]  }
 0x102   :  { %v1328_v35 = vpop.f32.mrf.mxu0  ;;  %v5152_v40 = vld [vmem:[%s7292_s4 + $0x1b0] ss:$8 sps:$4 sm:$0xff]   ;;  %2091 = vmatprep.subr.bf16.mxu1 %v5154_v39  ;;  %v5157_v45 = vld [vmem:[%s7292_s4 + $0x1a4] ss:$8 sps:$4 sm:$0xff]   ;;  %v5155_v3 = vld [vmem:[%s7292_s4 + $0x1a0] ss:$8 sps:$4 sm:$0xff]  }
 0x103   :  { %v1369_v13 = vpop.f32.mrf.mxu1  ;;  %2055 = vmatpush2.bf16.msra.mxu0 %v5110_v33  ;;  %2092 = vmatpush2.bf16.msra.mxu1 %v5152_v40  ;;  %v5160_v32 = vld [vmem:[%s7292_s4 + $0x194] ss:$8 sps:$4 sm:$0xff]   ;;  %v5158_v47 = vld [vmem:[%s7292_s4 + $0x190] ss:$8 sps:$4 sm:$0xff]   ;;  %v5163_v49 = vld [vmem:[%s7292_s4 + $0x184] ss:$8 sps:$4 sm:$0xff]  }
 0x104   :  { %v1330_v37 = vpop.f32.mrf.mxu0  ;;  %2056 = vmatprep.subr.bf16.mxu0 %v5115_v34  ;;  %2093 = vmatprep.subr.bf16.mxu1 %v5157_v45  ;;  %v5161_v50 = vld [vmem:[%s7292_s4 + $0x180] ss:$8 sps:$4 sm:$0xff]   ;;  %v6493_v26 = vsub.s32 0, %v5776_v43  ;;  %v6499_v52 = vsub.s32 1, %v5776_v43  ;;  %v6505_v12 = vsub.s32 2, %v5776_v43  ;;  %v6508_v14 = vsub.s32 3, %v5776_v43 }
 0x105   :  { %v1371_v38 = vpop.f32.mrf.mxu1  ;;  %v288_v51 = vld [vmem:[%s7291_s3] sm:$0xf]  ;;  %vm2177_vm1 = vcmask 1041408   ;;  %vm4170_vm2 = vcmask 156672   ;;  %vm2173_vm3 = vcmask 162816  }
 0x106   :  { %v1332_v41 = vpop.f32.mrf.mxu0  ;;  %v293_v53 = vrot.slane %v288_v51, %v6493_v26  ;;  %v297_v54 = vrot.slane %v288_v51, %v6499_v52  ;;  %v301_v16 = vrot.slane %v288_v51, %v6505_v12  ;;  %v305_v18 = vrot.slane %v288_v51, %v6508_v14  ;;  %v5168_v51 = vld [vmem:[%s7294_s6] ss:$16 sps:$4 sm:$0xff]  }
 0x107   :  { %v1373_v42 = vpop.f32.mrf.mxu1  ;;  %2057 = vmatpush2.bf16.msra.mxu0 %v5113_v36  ;;  %2094 = vmatpush2.bf16.msra.mxu1 %v5155_v3  ;;  %v2119_v3 = vld [vmem:[%s7294_s6 + $0x20] sm:$0x33] }
 0x108   :  { %v1333_v44 = vpop.f32.mrf.mxu0  ;;  %2095 = vmatprep.subr.bf16.mxu1 %v5160_v32  ;;  %v1329_v55 = vadd.f32 %v1328_v35, %v293_v53  ;;  %v1331_v56 = vadd.f32 %v1330_v37, %v297_v54  ;;  %v5171_v53 = vld [vmem:[%s7294_s6 + $0x8] ss:$16 sps:$4 sm:$0xff]  }
 0x109   :  { %v1374_v20 = vpop.f32.mrf.mxu1  ;;  %v5176_v54 = vld [vmem:[%s7296_s8 + $0x18c] ss:$28 sps:$4 sm:$0xff]  }
 0x10a   :  { %v1370_v57 = vadd.f32 %v1369_v13, %v1329_v55  ;;  %v1372_v59 = vadd.f32 %v1371_v38, %v1331_v56  ;;  %v5179_v55 = vld [vmem:[%s7296_s8 + $0x50c] ss:$28 sps:$4 sm:$0xff]  }
 0x10b   :  { %v1451_v46 = vpop.f32.mrf.mxu1  ;;  %2096 = vmatpush2.bf16.msra.mxu1 %v5158_v47  ;;  %v4480_v47 = vcombine.low %v2119_v3, %v2119_v3 }
 0x10c   :  { %2097 = vmatprep.subr.bf16.mxu1 %v5163_v49 }
 0x10d   :  { %v1453_v31 = vpop.f32.mrf.mxu1  ;;  %v2179_v49 = vsel %vm2177_vm1, %v4480_v47, 0  ;;  %v5221_v47 = vld [vmem:[%s7296_s8 + $0x384] ss:$28 sps:$4 sm:$0xff]  }
 0x10f   :  { %v1455_v48 = vpop.f32.mrf.mxu1  ;;  %2098 = vmatpush2.bf16.msra.mxu1 %v5161_v50 }
 0x111   :  { %v1456_v19 = vpop.f32.mrf.mxu1 }
 0x112   :  { %v5170_v19 = vld [vmem:[%s7294_s6 + $0x4] ss:$16 sps:$4 sm:$0xff]  }
 0x142   :  { %v1410_v58 = vpop.f32.mrf.mxu0 }
 0x143   :  { %v1411_v60 = vadd.f32 %v1410_v58, %v1370_v57 }
 0x144   :  { %v1412_v61 = vpop.f32.mrf.mxu0 }
 0x145   :  { %v1452_v62 = vadd.f32 %v1451_v46, %v1411_v60  ;;  %v1413_v63 = vadd.f32 %v1412_v61, %v1372_v59  ;;  %v2120_v46 = vld [vmem:[%s7294_s6 + $0x28] sm:$0x33]  ;;  %v1694_v60 = vld [vmem:[%s7293_s5] sm:$0x3] }
 0x146   :  { %v1414_v0 = vpop.f32.mrf.mxu0  ;;  %v4483_v32 = vcombine.high %v2120_v46, %v2120_v46  ;;  %v4482_v48 = vcombine.low %v2120_v46, %v2120_v46  ;;  %v1699_v61 = vrot.slane %v1694_v60, %v6493_v26  ;;  %v5210_v46 = vld [vmem:[%s7296_s8 + $0x38] ss:$28 sps:$4 sm:$0xff]  }
 0x147   :  { %v1454_v1 = vadd.f32 %v1453_v31, %v1413_v63  ;;  %v1622_v2 = vmax.f32 %v1452_v62, 0.0  ;;  %v4481_v31 = vcombine.high %v2119_v3, %v2119_v3  ;;  %v1703_v62 = vrot.slane %v1694_v60, %v6499_v52  ;;  %v5215_v3 = vld [vmem:[%s7296_s8 + $0x3bc] ss:$28 sps:$4 sm:$0xff]  }
 0x148   :  { %v1415_v4 = vpop.f32.mrf.mxu0  ;;  %4486 = vmatprep.subr.msk.bf16.mxu1 %vm2177_vm1, %v4483_v32  ;;  %v2185_v50 = vsel %vm2177_vm1, %v4482_v48, 0  ;;  %v5218_v32 = vld [vmem:[%s7296_s8 + $0x4] ss:$28 sps:$4 sm:$0xff]   ;;  %v5237_v60 = vld [vmem:[%s7296_s8 + $0x658] ss:$28 sps:$4 sm:$0xff]  }
 0x149   :  { %v1623_v5 = vmax.f32 %v1454_v1, 0.0  ;;  %v1626_v8 = vpack.c.bf16 %v1622_v2, %v1622_v2  ;;  %4484 = vmatprep.subr.msk.bf16.mxu0 %vm2177_vm1, %v4481_v31  ;;  %v5213_v31 = vld [vmem:[%s7296_s8 + $0x3b8] ss:$28 sps:$4 sm:$0xff]   ;;  %v5216_v48 = vld [vmem:[%s7296_s8] ss:$28 sps:$4 sm:$0xff]  }
 0x14b   :  { %v1492_v6 = vpop.f32.mrf.mxu1  ;;  %v1627_v7 = vpack.c.bf16 %v1623_v5, %v1623_v5 }
 0x14c   :  { %v1493_v22 = vadd.f32 %v1492_v6, %v301_v16 }
 0x14d   :  { %v1494_v9 = vpop.f32.mrf.mxu1  ;;  %2058 = vmatprep.mubr.bf16.mxu0 %v1627_v7 }
 0x14e   :  { %2059 = vmatmul.mubr.bf16.vlgmr.msra.gmra.mxu0 %v1626_v8  ;;  %v1495_v24 = vadd.f32 %v1494_v9, %v305_v18  ;;  %v5177_v18 = vld [vmem:[%s7296_s8 + $0x508] ss:$28 sps:$4 sm:$0xff]  }
 0x14f   :  { %v1496_v10 = vpop.f32.mrf.mxu1  ;;  %2222 = vmatprep.mubr.bf16.mxu0 %v5589_v29  ;;  %2203 = vmatpush1.bf16.msra.mxu0 %v2179_v49  ;;  %v5227_v49 = vld [vmem:[%s7296_s8 + $0x6cc] ss:$28 sps:$4 sm:$0xff]  }
 0x150   :  { %2204 = vmatprep.subr.bf16.mxu0 %v5170_v19  ;;  %v2111_v10 = vld [vmem:[%s7289_s1] sm:$0x3] }
 0x151   :  { %v1497_v11 = vpop.f32.mrf.mxu1  ;;  %v5219_v19 = vld [vmem:[%s7296_s8 + $0x380] ss:$28 sps:$4 sm:$0xff]  }
 0x153   :  { %2205 = vmatpush1.bf16.msra.mxu0 %v5168_v51  ;;  %v5225_v51 = vld [vmem:[%s7296_s8 + $0x6c8] ss:$28 sps:$4 sm:$0xff]  }
 0x154   :  { %3725 = vmatprep.subr.bf16.mxu0 %v5176_v54  ;;  %v5233_v54 = vld [vmem:[%s7296_s8 + $0x694] ss:$28 sps:$4 sm:$0xff]  }
 0x182   :  { %v1533_v15 = vpop.f32.mrf.mxu0 }
 0x183   :  { %v1534_v25 = vadd.f32 %v1533_v15, %v1493_v22  ;;  %v5182_v22 = vld [vmem:[%s7296_s8 + $0x154] ss:$28 sps:$4 sm:$0xff]  }
 0x184   :  { %v1535_v17 = vpop.f32.mrf.mxu0 }
 0x185   :  { %v1536_v30 = vadd.f32 %v1535_v17, %v1495_v24  ;;  %v5174_v17 = vld [vmem:[%s7296_s8 + $0x188] ss:$28 sps:$4 sm:$0xff]   ;;  %v5180_v24 = vld [vmem:[%s7296_s8 + $0x150] ss:$28 sps:$4 sm:$0xff]  }
 0x186   :  { %v1537_v21 = vpop.f32.mrf.mxu0 }
 0x188   :  { %v1538_v23 = vpop.f32.mrf.mxu0 }
 0x189   :  { %v5185_v23 = vld [vmem:[%s7296_s8 + $0x4d4] ss:$28 sps:$4 sm:$0xff]  }
 0x18a   :  { %v1615_v28 = vpop.f32.mrf.mxu0 }
 0x18b   :  { %v1574_v27 = vpop.f32.mrf.mxu1 }
 0x18c   :  { %v1575_v33 = vadd.f32 %v1574_v27, %v1534_v25  ;;  %v1617_v35 = vpop.f32.mrf.mxu0  ;;  %v5183_v25 = vld [vmem:[%s7296_s8 + $0x4d0] ss:$28 sps:$4 sm:$0xff]   ;;  %v5188_v27 = vld [vmem:[%s7296_s8 + $0x11c] ss:$28 sps:$4 sm:$0xff]  }
 0x18d   :  { %v1576_v34 = vpop.f32.mrf.mxu1 }
 0x18e   :  { %v1616_v13 = vadd.f32 %v1615_v28, %v1575_v33  ;;  %v1577_v36 = vadd.f32 %v1576_v34, %v1536_v30  ;;  %v1619_v38 = vpop.f32.mrf.mxu0  ;;  %v5191_v28 = vld [vmem:[%s7296_s8 + $0x49c] ss:$28 sps:$4 sm:$0xff]   ;;  %v5194_v34 = vld [vmem:[%s7296_s8 + $0xe4] ss:$28 sps:$4 sm:$0xff]  }
 0x18f   :  { %v1578_v37 = vpop.f32.mrf.mxu1  ;;  %v5186_v30 = vld [vmem:[%s7296_s8 + $0x118] ss:$28 sps:$4 sm:$0xff]   ;;  %v5203_v38 = vld [vmem:[%s7296_s8 + $0x42c] ss:$28 sps:$4 sm:$0xff]  }
 0x190   :  { %v1618_v39 = vadd.f32 %v1617_v35, %v1577_v36  ;;  %v1624_v40 = vmax.f32 %v1616_v13, 0.0  ;;  %v1620_v42 = vpop.f32.mrf.mxu0  ;;  %v5189_v33 = vld [vmem:[%s7296_s8 + $0x498] ss:$28 sps:$4 sm:$0xff]   ;;  %v5197_v35 = vld [vmem:[%s7296_s8 + $0x464] ss:$28 sps:$4 sm:$0xff]  }
 0x191   :  { %v1579_v41 = vpop.f32.mrf.mxu1  ;;  %v5192_v13 = vld [vmem:[%s7296_s8 + $0xe0] ss:$28 sps:$4 sm:$0xff]   ;;  %v5200_v37 = vld [vmem:[%s7296_s8 + $0xac] ss:$28 sps:$4 sm:$0xff]   ;;  %v5209_v42 = vld [vmem:[%s7296_s8 + $0x3f4] ss:$28 sps:$4 sm:$0xff]  }
 0x192   :  { %v1625_v44 = vmax.f32 %v1618_v39, 0.0  ;;  %v1628_v45 = vpack.c.bf16 %v1624_v40, %v1624_v40  ;;  %v5195_v36 = vld [vmem:[%s7296_s8 + $0x460] ss:$28 sps:$4 sm:$0xff]   ;;  %v5198_v39 = vld [vmem:[%s7296_s8 + $0xa8] ss:$28 sps:$4 sm:$0xff]  }
 0x193   :  { %v5201_v40 = vld [vmem:[%s7296_s8 + $0x428] ss:$28 sps:$4 sm:$0xff]   ;;  %v5206_v41 = vld [vmem:[%s7296_s8 + $0x74] ss:$28 sps:$4 sm:$0xff]  }
 0x194   :  { %v1629_v20 = vpack.c.bf16 %v1625_v44, %v1625_v44  ;;  %v5204_v44 = vld [vmem:[%s7296_s8 + $0x70] ss:$28 sps:$4 sm:$0xff]  }
 0x196   :  { %2099 = vmatprep.mubr.bf16.mxu1 %v1629_v20  ;;  %v5207_v20 = vld [vmem:[%s7296_s8 + $0x3f0] ss:$28 sps:$4 sm:$0xff]  }
 0x197   :  { %2100 = vmatmul.mubr.bf16.vlgmr.msra.gmra.mxu1 %v1628_v45  ;;  %v5212_v45 = vld [vmem:[%s7296_s8 + $0x3c] ss:$28 sps:$4 sm:$0xff]  }
 0x198   :  { %2263 = vmatprep.mubr.bf16.mxu1 %v5589_v29  ;;  %v5173_v29 = vld [vmem:[%s7294_s6 + $0xc] ss:$16 sps:$4 sm:$0xff]   ;;  %2244 = vmatpush1.bf16.msra.mxu1 %v2185_v50  ;;  %v5222_v50 = vld [vmem:[%s7296_s8 + $0x348] ss:$28 sps:$4 sm:$0xff]  }
 0x199   :  { %2245 = vmatprep.subr.bf16.mxu1 %v5173_v29  ;;  %v5224_v29 = vld [vmem:[%s7296_s8 + $0x34c] ss:$28 sps:$4 sm:$0xff]  }
 0x19c   :  { %2246 = vmatpush1.bf16.msra.mxu1 %v5171_v53  ;;  %v5230_v53 = vld [vmem:[%s7296_s8 + $0x314] ss:$28 sps:$4 sm:$0xff]  }
 0x19d   :  { %3766 = vmatprep.subr.bf16.mxu1 %v5179_v55  ;;  %v5228_v55 = vld [vmem:[%s7296_s8 + $0x310] ss:$28 sps:$4 sm:$0xff]  }
 0x20e   :  { %v2060_v56 = vpop.f32.mrf.mxu0 }
 0x20f   :  { %v2061_v63 = vadd.f32 %v2060_v56, %v1699_v61  ;;  %v5231_v56 = vld [vmem:[%s7296_s8 + $0x690] ss:$28 sps:$4 sm:$0xff]   ;;  %v5242_v61 = vld [vmem:[%s7296_s8 + $0x2a4] ss:$28 sps:$4 sm:$0xff]  }
 0x210   :  { %v2062_v57 = vpop.f32.mrf.mxu0 }
 0x211   :  { %v2063_v1 = vadd.f32 %v2062_v57, %v1703_v62  ;;  %v5236_v57 = vld [vmem:[%s7296_s8 + $0x2dc] ss:$28 sps:$4 sm:$0xff]   ;;  %v5245_v62 = vld [vmem:[%s7296_s8 + $0x624] ss:$28 sps:$4 sm:$0xff]  }
 0x212   :  { %v2064_v58 = vpop.f32.mrf.mxu0 }
 0x213   :  { %v5239_v58 = vld [vmem:[%s7296_s8 + $0x65c] ss:$28 sps:$4 sm:$0xff]  }
 0x214   :  { %v2065_v59 = vpop.f32.mrf.mxu0 }
 0x215   :  { %v5234_v59 = vld [vmem:[%s7296_s8 + $0x2d8] ss:$28 sps:$4 sm:$0xff]  }
 0x257   :  { %v2101_v0 = vpop.f32.mrf.mxu1 }
 0x258   :  { %v2102_v2 = vadd.f32 %v2101_v0, %v2061_v63  ;;  %v5240_v63 = vld [vmem:[%s7296_s8 + $0x2a0] ss:$28 sps:$4 sm:$0xff]  }
 0x259   :  { %v2103_v4 = vpop.f32.mrf.mxu1  ;;  %v5243_v0 = vld [vmem:[%s7296_s8 + $0x620] ss:$28 sps:$4 sm:$0xff]  }
 0x25a   :  { %v2104_v5 = vadd.f32 %v2103_v4, %v2063_v1  ;;  %4171 = vst.msk [vmem:[#allocation4] sm:$0x3] %vm4170_vm2, %v2102_v2  ;;  %v5248_v1 = vld [vmem:[%s7296_s8 + $0x26c] ss:$28 sps:$4 sm:$0xff]  }
 0x25b   :  { %v2105_v6 = vpop.f32.mrf.mxu1  ;;  %v5246_v4 = vld [vmem:[%s7296_s8 + $0x268] ss:$28 sps:$4 sm:$0xff]  }
 0x25c   :  { %v2108_v7 = vmul.f32 0.5, %v2104_v5  ;;  %4172 = vst.msk [vmem:[#allocation6] sm:$0x3] %vm4170_vm2, %v2104_v5  ;;  %v5249_v5 = vld [vmem:[%s7296_s8 + $0x5e8] ss:$28 sps:$4 sm:$0xff]  }
 0x25d   :  { %v2106_v8 = vpop.f32.mrf.mxu1  ;;  %v5254_v6 = vld [vmem:[%s7296_s8 + $0x234] ss:$28 sps:$4 sm:$0xff]  }
 0x25e   :  { %v2109_v9 = vmul.f32 1.442695, %v2108_v7  ;;  %v5257_v7 = vld [vmem:[%s7296_s8 + $0x5b4] ss:$28 sps:$4 sm:$0xff]  }
 0x25f   :  { %v5252_v8 = vld [vmem:[%s7296_s8 + $0x230] ss:$28 sps:$4 sm:$0xff]  }
 0x260   :  { %5494 = vpow2.f32 %v2109_v9  ;;  %v5255_v9 = vld [vmem:[%s7296_s8 + $0x5b0] ss:$28 sps:$4 sm:$0xff]  }
 0x26d   :  { %v5495_v11 = vpop.eup %5494 }
 0x26e   :  { %v2112_v15 = vmul.f32 %v5495_v11, %v2111_v10  ;;  %v5260_v10 = vld [vmem:[%s7296_s8 + $0x1fc] ss:$28 sps:$4 sm:$0xff]  }
 0x26f   :  { %v5263_v11 = vld [vmem:[%s7296_s8 + $0x57c] ss:$28 sps:$4 sm:$0xff]  }
 0x270   :  { %v2113_v16 = vadd.f32 %v2112_v15, %v2102_v2  ;;  %v5251_v2 = vld [vmem:[%s7296_s8 + $0x5ec] ss:$28 sps:$4 sm:$0xff]   ;;  %v5258_v15 = vld [vmem:[%s7296_s8 + $0x1f8] ss:$28 sps:$4 sm:$0xff]  }
 0x272   :  { %v2114_v21 = vpack.c.bf16 %v2113_v16, %v2113_v16  ;;  %v5261_v16 = vld [vmem:[%s7296_s8 + $0x578] ss:$28 sps:$4 sm:$0xff]  }
 0x274   :  { %4485 = vmatmul.mubr.msk.bf16.vlgmr.msra.gmra.mxu0 %vm2173_vm3, %v2114_v21  ;;  %4487 = vmatmul.mubr.msk.bf16.vlgmr.msra.gmra.mxu1 %vm2173_vm3, %v2114_v21  ;;  %v5264_v21 = vld [vmem:[%s7296_s8 + $0x1c0] ss:$28 sps:$4 sm:$0xff]  }
 0x275   :  { %3726 = vmatpush1.bf16.msra.mxu0 %v5174_v17  ;;  %3767 = vmatpush1.bf16.msra.mxu1 %v5177_v18  ;;  %v5266_v17 = vld [vmem:[%s7296_s8 + $0x1c4] ss:$28 sps:$4 sm:$0xff]  }
 0x276   :  { %3727 = vmatprep.subr.bf16.mxu0 %v5182_v22  ;;  %3768 = vmatprep.subr.bf16.mxu1 %v5185_v23  ;;  %v5269_v18 = vld [vmem:[%s7296_s8 + $0x544] ss:$28 sps:$4 sm:$0xff]   ;;  %v5272_v23 = vld [vmem:[%s7296_s8 + $0x194] ss:$28 sps:$4 sm:$0xff]  }
 0x277   :  { %v5267_v22 = vld [vmem:[%s7296_s8 + $0x540] ss:$28 sps:$4 sm:$0xff]  }
 0x279   :  { %3728 = vmatpush1.bf16.msra.mxu0 %v5180_v24  ;;  %3769 = vmatpush1.bf16.msra.mxu1 %v5183_v25  ;;  %v5275_v24 = vld [vmem:[%s7296_s8 + $0x514] ss:$28 sps:$4 sm:$0xff]   ;;  %v2121_v25 = vld [vmem:[%s7295_s7] sm:$0xf] }
 0x27a   :  { %3729 = vmatprep.subr.bf16.mxu0 %v5188_v27  ;;  %3770 = vmatprep.subr.bf16.mxu1 %v5191_v28  ;;  %v2126_v27 = vrot.slane %v2121_v25, %v6493_v26  ;;  %v2134_v28 = vrot.slane %v2121_v25, %v6505_v12 }
 0x27d   :  { %3730 = vmatpush1.bf16.msra.mxu0 %v5186_v30  ;;  %3771 = vmatpush1.bf16.msra.mxu1 %v5189_v33  ;;  %v2130_v30 = vrot.slane %v2121_v25, %v6499_v52  ;;  %v2138_v33 = vrot.slane %v2121_v25, %v6508_v14  ;;  %v5326_v25 = vld [vmem:[%s7296_s8 + $0x31c] ss:$28 sps:$4 sm:$0xff]  }
 0x27e   :  { %3731 = vmatprep.subr.bf16.mxu0 %v5194_v34  ;;  %3772 = vmatprep.subr.bf16.mxu1 %v5197_v35 }
 0x281   :  { %3732 = vmatpush1.bf16.msra.mxu0 %v5192_v13  ;;  %3773 = vmatpush1.bf16.msra.mxu1 %v5195_v36 }
 0x282   :  { %3733 = vmatprep.subr.bf16.mxu0 %v5200_v37  ;;  %3774 = vmatprep.subr.bf16.mxu1 %v5203_v38 }
 0x285   :  { %3734 = vmatpush1.bf16.msra.mxu0 %v5198_v39  ;;  %3775 = vmatpush1.bf16.msra.mxu1 %v5201_v40 }
 0x286   :  { %3735 = vmatprep.subr.bf16.mxu0 %v5206_v41  ;;  %3776 = vmatprep.subr.bf16.mxu1 %v5209_v42 }
 0x289   :  { %3736 = vmatpush1.bf16.msra.mxu0 %v5204_v44  ;;  %3777 = vmatpush1.bf16.msra.mxu1 %v5207_v20 }
 0x28a   :  { %3737 = vmatprep.subr.bf16.mxu0 %v5212_v45  ;;  %3778 = vmatprep.subr.bf16.mxu1 %v5215_v3 }
 0x28d   :  { %3738 = vmatpush1.bf16.msra.mxu0 %v5210_v46  ;;  %3779 = vmatpush1.bf16.msra.mxu1 %v5213_v31 }
 0x28e   :  { %3739 = vmatprep.subr.bf16.mxu0 %v5218_v32  ;;  %3780 = vmatprep.subr.bf16.mxu1 %v5221_v47 }
 0x291   :  { %3740 = vmatpush1.bf16.msra.mxu0 %v5216_v48  ;;  %3781 = vmatpush1.bf16.msra.mxu1 %v5219_v19  ;;  %v5270_v48 = vld [vmem:[%s7296_s8 + $0x190] ss:$28 sps:$4 sm:$0xff]  }
 0x292   :  { %3741 = vmatprep.subr.bf16.mxu0 %v5224_v29  ;;  %3782 = vmatprep.subr.bf16.mxu1 %v5227_v49  ;;  %v5273_v19 = vld [vmem:[%s7296_s8 + $0x510] ss:$28 sps:$4 sm:$0xff]  }
 0x295   :  { %3742 = vmatpush2.bf16.msra.mxu0 %v5222_v50  ;;  %3783 = vmatpush2.bf16.msra.mxu1 %v5225_v51  ;;  %v5278_v50 = vld [vmem:[%s7296_s8 + $0x15c] ss:$28 sps:$4 sm:$0xff]  }
 0x296   :  { %3743 = vmatprep.subr.bf16.mxu0 %v5230_v53  ;;  %3784 = vmatprep.subr.bf16.mxu1 %v5233_v54  ;;  %v5281_v51 = vld [vmem:[%s7296_s8 + $0x4dc] ss:$28 sps:$4 sm:$0xff]  }
 0x297   :  { %v5276_v53 = vld [vmem:[%s7296_s8 + $0x158] ss:$28 sps:$4 sm:$0xff]  }
 0x298   :  { %v5279_v54 = vld [vmem:[%s7296_s8 + $0x4d8] ss:$28 sps:$4 sm:$0xff]  }
 0x299   :  { %3744 = vmatpush2.bf16.msra.mxu0 %v5228_v55  ;;  %3785 = vmatpush2.bf16.msra.mxu1 %v5231_v56  ;;  %v5284_v55 = vld [vmem:[%s7296_s8 + $0x124] ss:$28 sps:$4 sm:$0xff]  }
 0x29a   :  { %3745 = vmatprep.subr.bf16.mxu0 %v5236_v57  ;;  %3786 = vmatprep.subr.bf16.mxu1 %v5239_v58  ;;  %v5287_v56 = vld [vmem:[%s7296_s8 + $0x4a4] ss:$28 sps:$4 sm:$0xff]  }
 0x29b   :  { %v5282_v57 = vld [vmem:[%s7296_s8 + $0x120] ss:$28 sps:$4 sm:$0xff]  }
 0x29c   :  { %v5285_v58 = vld [vmem:[%s7296_s8 + $0x4a0] ss:$28 sps:$4 sm:$0xff]  }
 0x29d   :  { %3746 = vmatpush2.bf16.msra.mxu0 %v5234_v59  ;;  %3787 = vmatpush2.bf16.msra.mxu1 %v5237_v60  ;;  %v5290_v59 = vld [vmem:[%s7296_s8 + $0xec] ss:$28 sps:$4 sm:$0xff]  }
 0x29e   :  { %3747 = vmatprep.subr.bf16.mxu0 %v5242_v61  ;;  %3788 = vmatprep.subr.bf16.mxu1 %v5245_v62  ;;  %v5293_v60 = vld [vmem:[%s7296_s8 + $0x46c] ss:$28 sps:$4 sm:$0xff]  }
 0x29f   :  { %v5288_v61 = vld [vmem:[%s7296_s8 + $0xe8] ss:$28 sps:$4 sm:$0xff]  }
 0x2a0   :  { %v5291_v62 = vld [vmem:[%s7296_s8 + $0x468] ss:$28 sps:$4 sm:$0xff]  }
 0x2a1   :  { %3748 = vmatpush2.bf16.msra.mxu0 %v5240_v63  ;;  %3789 = vmatpush2.bf16.msra.mxu1 %v5243_v0  ;;  %v5296_v63 = vld [vmem:[%s7296_s8 + $0xb4] ss:$28 sps:$4 sm:$0xff]  }
 0x2a2   :  { %3749 = vmatprep.subr.bf16.mxu0 %v5248_v1  ;;  %3790 = vmatprep.subr.bf16.mxu1 %v5251_v2  ;;  %v5299_v0 = vld [vmem:[%s7296_s8 + $0x434] ss:$28 sps:$4 sm:$0xff]  }
 0x2a3   :  { %v5294_v1 = vld [vmem:[%s7296_s8 + $0xb0] ss:$28 sps:$4 sm:$0xff]  }
 0x2a4   :  { %v5297_v2 = vld [vmem:[%s7296_s8 + $0x430] ss:$28 sps:$4 sm:$0xff]  }
 0x2a5   :  { %3750 = vmatpush2.bf16.msra.mxu0 %v5246_v4  ;;  %3791 = vmatpush2.bf16.msra.mxu1 %v5249_v5  ;;  %v5302_v4 = vld [vmem:[%s7296_s8 + $0x7c] ss:$28 sps:$4 sm:$0xff]  }
 0x2a6   :  { %3751 = vmatprep.subr.bf16.mxu0 %v5254_v6  ;;  %3792 = vmatprep.subr.bf16.mxu1 %v5257_v7  ;;  %v5305_v5 = vld [vmem:[%s7296_s8 + $0x3fc] ss:$28 sps:$4 sm:$0xff]  }
 0x2a7   :  { %v5300_v6 = vld [vmem:[%s7296_s8 + $0x78] ss:$28 sps:$4 sm:$0xff]  }
 0x2a8   :  { %v5303_v7 = vld [vmem:[%s7296_s8 + $0x3f8] ss:$28 sps:$4 sm:$0xff]  }
 0x2a9   :  { %3752 = vmatpush2.bf16.msra.mxu0 %v5252_v8  ;;  %3793 = vmatpush2.bf16.msra.mxu1 %v5255_v9  ;;  %v5308_v8 = vld [vmem:[%s7296_s8 + $0x44] ss:$28 sps:$4 sm:$0xff]  }
 0x2aa   :  { %3753 = vmatprep.subr.bf16.mxu0 %v5260_v10  ;;  %3794 = vmatprep.subr.bf16.mxu1 %v5263_v11  ;;  %v5311_v9 = vld [vmem:[%s7296_s8 + $0x3c4] ss:$28 sps:$4 sm:$0xff]  }
 0x2ab   :  { %v5306_v10 = vld [vmem:[%s7296_s8 + $0x40] ss:$28 sps:$4 sm:$0xff]  }
 0x2ac   :  { %v5309_v11 = vld [vmem:[%s7296_s8 + $0x3c0] ss:$28 sps:$4 sm:$0xff]  }
 0x2ad   :  { %3754 = vmatpush2.bf16.msra.mxu0 %v5258_v15  ;;  %3795 = vmatpush2.bf16.msra.mxu1 %v5261_v16  ;;  %v5314_v15 = vld [vmem:[%s7296_s8 + $0xc] ss:$28 sps:$4 sm:$0xff]  }
 0x2ae   :  { %3755 = vmatprep.subr.bf16.mxu0 %v5266_v17  ;;  %3796 = vmatprep.subr.bf16.mxu1 %v5269_v18  ;;  %v5317_v16 = vld [vmem:[%s7296_s8 + $0x38c] ss:$28 sps:$4 sm:$0xff]  }
 0x2af   :  { %v5312_v17 = vld [vmem:[%s7296_s8 + $0x8] ss:$28 sps:$4 sm:$0xff]  }
 0x2b0   :  { %v5315_v18 = vld [vmem:[%s7296_s8 + $0x388] ss:$28 sps:$4 sm:$0xff]  }
 0x2b1   :  { %3756 = vmatpush2.bf16.msra.mxu0 %v5264_v21  ;;  %3797 = vmatpush2.bf16.msra.mxu1 %v5267_v22  ;;  %v5320_v21 = vld [vmem:[%s7296_s8 + $0x354] ss:$28 sps:$4 sm:$0xff]  }
 0x2b2   :  { %3807 = vmatprep.subr.bf16.mxu0 %v5272_v23  ;;  %3848 = vmatprep.subr.bf16.mxu1 %v5275_v24  ;;  %v5323_v22 = vld [vmem:[%s7296_s8 + $0x6d4] ss:$28 sps:$4 sm:$0xff]  }
 0x2b3   :  { %v5318_v23 = vld [vmem:[%s7296_s8 + $0x350] ss:$28 sps:$4 sm:$0xff]  }
 0x2b4   :  { %v5321_v24 = vld [vmem:[%s7296_s8 + $0x6d0] ss:$28 sps:$4 sm:$0xff]  }
 0x334   :  { %v2224_v34 = vpop.f32.mrf.mxu0  ;;  %v2265_v35 = vpop.f32.mrf.mxu1 }
 0x335   :  { %v2225_v13 = vadd.f32 %v2224_v34, %v2126_v27  ;;  %v2266_v36 = vadd.f32 %v2265_v35, %v2134_v28  ;;  %v5329_v27 = vld [vmem:[%s7296_s8 + $0x69c] ss:$28 sps:$4 sm:$0xff]   ;;  %v5335_v34 = vld [vmem:[%s7296_s8 + $0x664] ss:$28 sps:$4 sm:$0xff]  }
 0x336   :  { %v2226_v37 = vpop.f32.mrf.mxu0  ;;  %v2267_v38 = vpop.f32.mrf.mxu1  ;;  %v5324_v28 = vld [vmem:[%s7296_s8 + $0x318] ss:$28 sps:$4 sm:$0xff]   ;;  %v5330_v35 = vld [vmem:[%s7296_s8 + $0x2e0] ss:$28 sps:$4 sm:$0xff]  }
 0x337   :  { %v2227_v39 = vadd.f32 %v2226_v37, %v2130_v30  ;;  %v2268_v40 = vadd.f32 %v2267_v38, %v2138_v33  ;;  %v2272_v41 = vmax.f32 %v2225_v13, 0.0  ;;  %v2274_v42 = vmax.f32 %v2266_v36, 0.0  ;;  %v5327_v30 = vld [vmem:[%s7296_s8 + $0x698] ss:$28 sps:$4 sm:$0xff]   ;;  %v5332_v33 = vld [vmem:[%s7296_s8 + $0x2e4] ss:$28 sps:$4 sm:$0xff]  }
 0x338   :  { %v2228_v44 = vpop.f32.mrf.mxu0  ;;  %v2269_v20 = vpop.f32.mrf.mxu1  ;;  %v5333_v13 = vld [vmem:[%s7296_s8 + $0x660] ss:$28 sps:$4 sm:$0xff]   ;;  %v5338_v36 = vld [vmem:[%s7296_s8 + $0x2ac] ss:$28 sps:$4 sm:$0xff]  }
 0x339   :  { %v2273_v45 = vmax.f32 %v2227_v39, 0.0  ;;  %v2275_v3 = vmax.f32 %v2268_v40, 0.0  ;;  %v6754_v29 = vpack.c.bf16 %v2272_v41, %v2272_v41  ;;  %v6756_v49 = vpack.c.bf16 %v2274_v42, %v2274_v42  ;;  %v5341_v37 = vld [vmem:[%s7296_s8 + $0x62c] ss:$28 sps:$4 sm:$0xff]   ;;  %v5344_v40 = vld [vmem:[%s7296_s8 + $0x274] ss:$28 sps:$4 sm:$0xff]  }
 0x33a   :  { %v2229_v46 = vpop.f32.mrf.mxu0  ;;  %v2270_v31 = vpop.f32.mrf.mxu1  ;;  %v5336_v38 = vld [vmem:[%s7296_s8 + $0x2a8] ss:$28 sps:$4 sm:$0xff]   ;;  %v5347_v41 = vld [vmem:[%s7296_s8 + $0x5f4] ss:$28 sps:$4 sm:$0xff]   ;;  %v5350_v20 = vld [vmem:[%s7296_s8 + $0x23c] ss:$28 sps:$4 sm:$0xff]  }
 0x33b   :  { %v6744_v32 = vpack.c.bf16 %v2273_v45, %v2273_v45  ;;  %v6746_v47 = vpack.c.bf16 %v2275_v3, %v2275_v3  ;;  %v5339_v39 = vld [vmem:[%s7296_s8 + $0x628] ss:$28 sps:$4 sm:$0xff]   ;;  %v5342_v42 = vld [vmem:[%s7296_s8 + $0x270] ss:$28 sps:$4 sm:$0xff]   ;;  %v5353_v45 = vld [vmem:[%s7296_s8 + $0x5bc] ss:$28 sps:$4 sm:$0xff]  }
 0x33c   :  { %v5345_v44 = vld [vmem:[%s7296_s8 + $0x5f0] ss:$28 sps:$4 sm:$0xff]   ;;  %v5348_v3 = vld [vmem:[%s7296_s8 + $0x238] ss:$28 sps:$4 sm:$0xff]   ;;  %v5356_v31 = vld [vmem:[%s7296_s8 + $0x204] ss:$28 sps:$4 sm:$0xff]  }
 0x33d   :  { %3757 = vmatprep.mubr.bf16.mxu0 %v6744_v32  ;;  %3798 = vmatprep.mubr.bf16.mxu1 %v6746_v47  ;;  %v5351_v46 = vld [vmem:[%s7296_s8 + $0x5b8] ss:$28 sps:$4 sm:$0xff]  }
 0x33e   :  { %3758 = vmatmul.mubr.bf16.vlgmr.msra.gmra.mxu0 %v6754_v29  ;;  %3799 = vmatmul.mubr.bf16.vlgmr.msra.gmra.mxu1 %v6756_v49 }
 0x33f   :  { %3808 = vmatpush1.bf16.msra.mxu0 %v5270_v48  ;;  %3849 = vmatpush1.bf16.msra.mxu1 %v5273_v19  ;;  %v5359_v48 = vld [vmem:[%s7296_s8 + $0x584] ss:$28 sps:$4 sm:$0xff]  }
 0x340   :  { %3839 = vmatprep.mubr.bf16.mxu0 %v6744_v32  ;;  %3880 = vmatprep.mubr.bf16.mxu1 %v6746_v47  ;;  %v5354_v19 = vld [vmem:[%s7296_s8 + $0x200] ss:$28 sps:$4 sm:$0xff]  }
 0x341   :  { %3809 = vmatprep.subr.bf16.mxu0 %v5278_v50  ;;  %3850 = vmatprep.subr.bf16.mxu1 %v5281_v51  ;;  %v5357_v50 = vld [vmem:[%s7296_s8 + $0x580] ss:$28 sps:$4 sm:$0xff]   ;;  %v5362_v51 = vld [vmem:[%s7296_s8 + $0x1cc] ss:$28 sps:$4 sm:$0xff]  }
 0x343   :  { %3810 = vmatpush1.bf16.msra.mxu0 %v5276_v53  ;;  %3851 = vmatpush1.bf16.msra.mxu1 %v5279_v54  ;;  %v5365_v53 = vld [vmem:[%s7296_s8 + $0x54c] ss:$28 sps:$4 sm:$0xff]  }
 0x344   :  { %3811 = vmatprep.subr.bf16.mxu0 %v5284_v55  ;;  %3852 = vmatprep.subr.bf16.mxu1 %v5287_v56  ;;  %v5360_v54 = vld [vmem:[%s7296_s8 + $0x1c8] ss:$28 sps:$4 sm:$0xff]   ;;  %v5368_v56 = vld [vmem:[%s7296_s8 + $0x19c] ss:$28 sps:$4 sm:$0xff]  }
 0x345   :  { %v5363_v55 = vld [vmem:[%s7296_s8 + $0x548] ss:$28 sps:$4 sm:$0xff]  }
 0x347   :  { %3812 = vmatpush1.bf16.msra.mxu0 %v5282_v57  ;;  %3853 = vmatpush1.bf16.msra.mxu1 %v5285_v58  ;;  %v5371_v57 = vld [vmem:[%s7296_s8 + $0x51c] ss:$28 sps:$4 sm:$0xff]  }
 0x348   :  { %3813 = vmatprep.subr.bf16.mxu0 %v5290_v59  ;;  %3854 = vmatprep.subr.bf16.mxu1 %v5293_v60  ;;  %v5366_v58 = vld [vmem:[%s7296_s8 + $0x198] ss:$28 sps:$4 sm:$0xff]   ;;  %v5374_v60 = vld [vmem:[%s7296_s8 + $0x164] ss:$28 sps:$4 sm:$0xff]  }
 0x349   :  { %v5369_v59 = vld [vmem:[%s7296_s8 + $0x518] ss:$28 sps:$4 sm:$0xff]  }
 0x34b   :  { %3814 = vmatpush1.bf16.msra.mxu0 %v5288_v61  ;;  %3855 = vmatpush1.bf16.msra.mxu1 %v5291_v62  ;;  %v5377_v61 = vld [vmem:[%s7296_s8 + $0x4e4] ss:$28 sps:$4 sm:$0xff]  }
 0x34c   :  { %3815 = vmatprep.subr.bf16.mxu0 %v5296_v63  ;;  %3856 = vmatprep.subr.bf16.mxu1 %v5299_v0  ;;  %v5372_v62 = vld [vmem:[%s7296_s8 + $0x160] ss:$28 sps:$4 sm:$0xff]   ;;  %v5380_v0 = vld [vmem:[%s7296_s8 + $0x12c] ss:$28 sps:$4 sm:$0xff]  }
 0x34d   :  { %v5375_v63 = vld [vmem:[%s7296_s8 + $0x4e0] ss:$28 sps:$4 sm:$0xff]  }
 0x34f   :  { %3816 = vmatpush1.bf16.msra.mxu0 %v5294_v1  ;;  %3857 = vmatpush1.bf16.msra.mxu1 %v5297_v2  ;;  %v5383_v1 = vld [vmem:[%s7296_s8 + $0x4ac] ss:$28 sps:$4 sm:$0xff]  }
 0x350   :  { %3817 = vmatprep.subr.bf16.mxu0 %v5302_v4  ;;  %3858 = vmatprep.subr.bf16.mxu1 %v5305_v5  ;;  %v5378_v2 = vld [vmem:[%s7296_s8 + $0x128] ss:$28 sps:$4 sm:$0xff]   ;;  %v5386_v5 = vld [vmem:[%s7296_s8 + $0xf4] ss:$28 sps:$4 sm:$0xff]  }
 0x351   :  { %v5381_v4 = vld [vmem:[%s7296_s8 + $0x4a8] ss:$28 sps:$4 sm:$0xff]  }
 0x353   :  { %3818 = vmatpush1.bf16.msra.mxu0 %v5300_v6  ;;  %3859 = vmatpush1.bf16.msra.mxu1 %v5303_v7  ;;  %v5389_v6 = vld [vmem:[%s7296_s8 + $0x474] ss:$28 sps:$4 sm:$0xff]  }
 0x354   :  { %3819 = vmatprep.subr.bf16.mxu0 %v5308_v8  ;;  %3860 = vmatprep.subr.bf16.mxu1 %v5311_v9  ;;  %v5384_v7 = vld [vmem:[%s7296_s8 + $0xf0] ss:$28 sps:$4 sm:$0xff]   ;;  %v5392_v9 = vld [vmem:[%s7296_s8 + $0xbc] ss:$28 sps:$4 sm:$0xff]  }
 0x355   :  { %v5387_v8 = vld [vmem:[%s7296_s8 + $0x470] ss:$28 sps:$4 sm:$0xff]  }
 0x357   :  { %3820 = vmatpush1.bf16.msra.mxu0 %v5306_v10  ;;  %3861 = vmatpush1.bf16.msra.mxu1 %v5309_v11  ;;  %v5395_v10 = vld [vmem:[%s7296_s8 + $0x43c] ss:$28 sps:$4 sm:$0xff]  }
 0x358   :  { %3821 = vmatprep.subr.bf16.mxu0 %v5314_v15  ;;  %3862 = vmatprep.subr.bf16.mxu1 %v5317_v16  ;;  %v5390_v11 = vld [vmem:[%s7296_s8 + $0xb8] ss:$28 sps:$4 sm:$0xff]   ;;  %v5398_v16 = vld [vmem:[%s7296_s8 + $0x84] ss:$28 sps:$4 sm:$0xff]  }
 0x359   :  { %v5393_v15 = vld [vmem:[%s7296_s8 + $0x438] ss:$28 sps:$4 sm:$0xff]  }
 0x35b   :  { %3822 = vmatpush1.bf16.msra.mxu0 %v5312_v17  ;;  %3863 = vmatpush1.bf16.msra.mxu1 %v5315_v18  ;;  %v5401_v17 = vld [vmem:[%s7296_s8 + $0x404] ss:$28 sps:$4 sm:$0xff]  }
 0x35c   :  { %3823 = vmatprep.subr.bf16.mxu0 %v5320_v21  ;;  %3864 = vmatprep.subr.bf16.mxu1 %v5323_v22  ;;  %v5396_v18 = vld [vmem:[%s7296_s8 + $0x80] ss:$28 sps:$4 sm:$0xff]   ;;  %v5404_v22 = vld [vmem:[%s7296_s8 + $0x4c] ss:$28 sps:$4 sm:$0xff]  }
 0x35d   :  { %v5399_v21 = vld [vmem:[%s7296_s8 + $0x400] ss:$28 sps:$4 sm:$0xff]  }
 0x35f   :  { %3824 = vmatpush2.bf16.msra.mxu0 %v5318_v23  ;;  %3865 = vmatpush2.bf16.msra.mxu1 %v5321_v24  ;;  %v5407_v23 = vld [vmem:[%s7296_s8 + $0x3cc] ss:$28 sps:$4 sm:$0xff]  }
 0x360   :  { %3825 = vmatprep.subr.bf16.mxu0 %v5326_v25  ;;  %3866 = vmatprep.subr.bf16.mxu1 %v5329_v27  ;;  %v5402_v24 = vld [vmem:[%s7296_s8 + $0x48] ss:$28 sps:$4 sm:$0xff]   ;;  %v5410_v27 = vld [vmem:[%s7296_s8 + $0x14] ss:$28 sps:$4 sm:$0xff]  }
 0x361   :  { %v5405_v25 = vld [vmem:[%s7296_s8 + $0x3c8] ss:$28 sps:$4 sm:$0xff]  }
 0x363   :  { %3826 = vmatpush2.bf16.msra.mxu0 %v5324_v28  ;;  %3867 = vmatpush2.bf16.msra.mxu1 %v5327_v30  ;;  %v5413_v28 = vld [vmem:[%s7296_s8 + $0x394] ss:$28 sps:$4 sm:$0xff]  }
 0x364   :  { %3827 = vmatprep.subr.bf16.mxu0 %v5332_v33  ;;  %3868 = vmatprep.subr.bf16.mxu1 %v5335_v34  ;;  %v5408_v30 = vld [vmem:[%s7296_s8 + $0x10] ss:$28 sps:$4 sm:$0xff]   ;;  %v5416_v34 = vld [vmem:[%s7296_s8 + $0x35c] ss:$28 sps:$4 sm:$0xff]  }
 0x365   :  { %v5411_v33 = vld [vmem:[%s7296_s8 + $0x390] ss:$28 sps:$4 sm:$0xff]  }
 0x367   :  { %3828 = vmatpush2.bf16.msra.mxu0 %v5330_v35  ;;  %3869 = vmatpush2.bf16.msra.mxu1 %v5333_v13  ;;  %v5419_v35 = vld [vmem:[%s7296_s8 + $0x6dc] ss:$28 sps:$4 sm:$0xff]  }
 0x368   :  { %3829 = vmatprep.subr.bf16.mxu0 %v5338_v36  ;;  %3870 = vmatprep.subr.bf16.mxu1 %v5341_v37  ;;  %v5414_v13 = vld [vmem:[%s7296_s8 + $0x358] ss:$28 sps:$4 sm:$0xff]   ;;  %v5422_v37 = vld [vmem:[%s7296_s8 + $0x324] ss:$28 sps:$4 sm:$0xff]  }
 0x369   :  { %v5417_v36 = vld [vmem:[%s7296_s8 + $0x6d8] ss:$28 sps:$4 sm:$0xff]  }
 0x36b   :  { %3830 = vmatpush2.bf16.msra.mxu0 %v5336_v38  ;;  %3871 = vmatpush2.bf16.msra.mxu1 %v5339_v39  ;;  %v5425_v38 = vld [vmem:[%s7296_s8 + $0x6a4] ss:$28 sps:$4 sm:$0xff]  }
 0x36c   :  { %3831 = vmatprep.subr.bf16.mxu0 %v5344_v40  ;;  %3872 = vmatprep.subr.bf16.mxu1 %v5347_v41  ;;  %v5420_v39 = vld [vmem:[%s7296_s8 + $0x320] ss:$28 sps:$4 sm:$0xff]   ;;  %v5428_v41 = vld [vmem:[%s7296_s8 + $0x2ec] ss:$28 sps:$4 sm:$0xff]  }
 0x36d   :  { %v5423_v40 = vld [vmem:[%s7296_s8 + $0x6a0] ss:$28 sps:$4 sm:$0xff]  }
 0x36f   :  { %3832 = vmatpush2.bf16.msra.mxu0 %v5342_v42  ;;  %3873 = vmatpush2.bf16.msra.mxu1 %v5345_v44  ;;  %v5431_v42 = vld [vmem:[%s7296_s8 + $0x66c] ss:$28 sps:$4 sm:$0xff]  }
 0x370   :  { %3833 = vmatprep.subr.bf16.mxu0 %v5350_v20  ;;  %3874 = vmatprep.subr.bf16.mxu1 %v5353_v45  ;;  %v5426_v44 = vld [vmem:[%s7296_s8 + $0x2e8] ss:$28 sps:$4 sm:$0xff]   ;;  %v5434_v45 = vld [vmem:[%s7296_s8 + $0x2b4] ss:$28 sps:$4 sm:$0xff]  }
 0x371   :  { %v5429_v20 = vld [vmem:[%s7296_s8 + $0x668] ss:$28 sps:$4 sm:$0xff]  }
 0x373   :  { %3834 = vmatpush2.bf16.msra.mxu0 %v5348_v3  ;;  %3875 = vmatpush2.bf16.msra.mxu1 %v5351_v46  ;;  %v5437_v3 = vld [vmem:[%s7296_s8 + $0x634] ss:$28 sps:$4 sm:$0xff]  }
 0x374   :  { %3835 = vmatprep.subr.bf16.mxu0 %v5356_v31  ;;  %3876 = vmatprep.subr.bf16.mxu1 %v5359_v48  ;;  %v5432_v46 = vld [vmem:[%s7296_s8 + $0x2b0] ss:$28 sps:$4 sm:$0xff]   ;;  %v5440_v48 = vld [vmem:[%s7296_s8 + $0x27c] ss:$28 sps:$4 sm:$0xff]  }
 0x375   :  { %v5435_v31 = vld [vmem:[%s7296_s8 + $0x630] ss:$28 sps:$4 sm:$0xff]  }
 0x377   :  { %3836 = vmatpush2.bf16.msra.mxu0 %v5354_v19  ;;  %3877 = vmatpush2.bf16.msra.mxu1 %v5357_v50  ;;  %v5443_v19 = vld [vmem:[%s7296_s8 + $0x5fc] ss:$28 sps:$4 sm:$0xff]  }
 0x378   :  { %3837 = vmatprep.subr.bf16.mxu0 %v5362_v51  ;;  %3878 = vmatprep.subr.bf16.mxu1 %v5365_v53  ;;  %v5438_v50 = vld [vmem:[%s7296_s8 + $0x278] ss:$28 sps:$4 sm:$0xff]   ;;  %v5446_v53 = vld [vmem:[%s7296_s8 + $0x244] ss:$28 sps:$4 sm:$0xff]  }
 0x379   :  { %v5441_v51 = vld [vmem:[%s7296_s8 + $0x5f8] ss:$28 sps:$4 sm:$0xff]  }
 0x37b   :  { %3838 = vmatpush2.bf16.msra.mxu0 %v5360_v54  ;;  %3879 = vmatpush2.bf16.msra.mxu1 %v5363_v55  ;;  %v5449_v54 = vld [vmem:[%s7296_s8 + $0x5c4] ss:$28 sps:$4 sm:$0xff]  }
 0x37c   :  { %3889 = vmatprep.subr.bf16.mxu0 %v5368_v56  ;;  %3930 = vmatprep.subr.bf16.mxu1 %v5371_v57  ;;  %v5444_v55 = vld [vmem:[%s7296_s8 + $0x240] ss:$28 sps:$4 sm:$0xff]   ;;  %v5452_v57 = vld [vmem:[%s7296_s8 + $0x20c] ss:$28 sps:$4 sm:$0xff]  }
 0x37d   :  { %v5447_v56 = vld [vmem:[%s7296_s8 + $0x5c0] ss:$28 sps:$4 sm:$0xff]  }
 0x37e   :  { %3840 = vmatmul.mubr.bf16.vlgmr.msra.gmra.mxu0 %v6754_v29  ;;  %3881 = vmatmul.mubr.bf16.vlgmr.msra.gmra.mxu1 %v6756_v49 }
 0x37f   :  { %3890 = vmatpush1.bf16.msra.mxu0 %v5366_v58  ;;  %3921 = vmatprep.mubr.bf16.mxu0 %v6744_v32  ;;  %v5455_v58 = vld [vmem:[%s7296_s8 + $0x58c] ss:$28 sps:$4 sm:$0xff]  }
 0x380   :  { %3931 = vmatpush1.bf16.msra.mxu1 %v5369_v59  ;;  %3962 = vmatprep.mubr.bf16.mxu1 %v6746_v47  ;;  %v5450_v59 = vld [vmem:[%s7296_s8 + $0x208] ss:$28 sps:$4 sm:$0xff]  }
 0x381   :  { %3891 = vmatprep.subr.bf16.mxu0 %v5374_v60  ;;  %3932 = vmatprep.subr.bf16.mxu1 %v5377_v61  ;;  %v5453_v60 = vld [vmem:[%s7296_s8 + $0x588] ss:$28 sps:$4 sm:$0xff]   ;;  %v5458_v61 = vld [vmem:[%s7296_s8 + $0x1d4] ss:$28 sps:$4 sm:$0xff]  }
 0x383   :  { %3892 = vmatpush1.bf16.msra.mxu0 %v5372_v62  ;;  %v5461_v62 = vld [vmem:[%s7296_s8 + $0x554] ss:$28 sps:$4 sm:$0xff]  }
 0x384   :  { %3933 = vmatpush1.bf16.msra.mxu1 %v5375_v63  ;;  %3893 = vmatprep.subr.bf16.mxu0 %v5380_v0  ;;  %v5456_v63 = vld [vmem:[%s7296_s8 + $0x1d0] ss:$28 sps:$4 sm:$0xff]  }
 0x385   :  { %3934 = vmatprep.subr.bf16.mxu1 %v5383_v1  ;;  %v5459_v0 = vld [vmem:[%s7296_s8 + $0x550] ss:$28 sps:$4 sm:$0xff]   ;;  %v5462_v1 = vld [vmem:[%s7296_s8 + $0x360] ss:$28 sps:$4 sm:$0xff]  }
 0x387   :  { %3894 = vmatpush1.bf16.msra.mxu0 %v5378_v2  ;;  %v5463_v2 = vld [vmem:[%s7296_s8 + $0x6e0] ss:$28 sps:$4 sm:$0xff]  }
 0x388   :  { %3935 = vmatpush1.bf16.msra.mxu1 %v5381_v4  ;;  %3895 = vmatprep.subr.bf16.mxu0 %v5386_v5  ;;  %v5464_v4 = vld [vmem:[%s7296_s8 + $0x1a0] ss:$28 sps:$4 sm:$0xff]  }
 0x389   :  { %3936 = vmatprep.subr.bf16.mxu1 %v5389_v6  ;;  %v5465_v5 = vld [vmem:[%s7296_s8 + $0x520] ss:$28 sps:$4 sm:$0xff]   ;;  %v5466_v6 = vld [vmem:[%s7296_s8 + $0x328] ss:$28 sps:$4 sm:$0xff]  }
 0x38b   :  { %3896 = vmatpush1.bf16.msra.mxu0 %v5384_v7  ;;  %v5467_v7 = vld [vmem:[%s7296_s8 + $0x6a8] ss:$28 sps:$4 sm:$0xff]  }
 0x38c   :  { %3937 = vmatpush1.bf16.msra.mxu1 %v5387_v8  ;;  %3897 = vmatprep.subr.bf16.mxu0 %v5392_v9  ;;  %v5468_v8 = vld [vmem:[%s7296_s8 + $0x168] ss:$28 sps:$4 sm:$0xff]  }
 0x38d   :  { %3938 = vmatprep.subr.bf16.mxu1 %v5395_v10  ;;  %v5469_v9 = vld [vmem:[%s7296_s8 + $0x4e8] ss:$28 sps:$4 sm:$0xff]   ;;  %v5470_v10 = vld [vmem:[%s7296_s8 + $0x2f0] ss:$28 sps:$4 sm:$0xff]  }
 0x38f   :  { %3898 = vmatpush1.bf16.msra.mxu0 %v5390_v11  ;;  %v5471_v11 = vld [vmem:[%s7296_s8 + $0x670] ss:$28 sps:$4 sm:$0xff]  }
 0x390   :  { %3939 = vmatpush1.bf16.msra.mxu1 %v5393_v15  ;;  %3899 = vmatprep.subr.bf16.mxu0 %v5398_v16  ;;  %v5473_v15 = vld [vmem:[%s7296_s8 + $0x4b0] ss:$28 sps:$4 sm:$0xff]   ;;  %v5475_v16 = vld [vmem:[%s7296_s8 + $0x638] ss:$28 sps:$4 sm:$0xff]  }
 0x391   :  { %3940 = vmatprep.subr.bf16.mxu1 %v5401_v17  ;;  %v5476_v17 = vld [vmem:[%s7296_s8 + $0xf8] ss:$28 sps:$4 sm:$0xff]  }
 0x393   :  { %3900 = vmatpush1.bf16.msra.mxu0 %v5396_v18  ;;  %v5477_v18 = vld [vmem:[%s7296_s8 + $0x478] ss:$28 sps:$4 sm:$0xff]  }
 0x394   :  { %3941 = vmatpush1.bf16.msra.mxu1 %v5399_v21  ;;  %3901 = vmatprep.subr.bf16.mxu0 %v5404_v22  ;;  %v5478_v21 = vld [vmem:[%s7296_s8 + $0x280] ss:$28 sps:$4 sm:$0xff]  }
 0x395   :  { %3942 = vmatprep.subr.bf16.mxu1 %v5407_v23  ;;  %v5479_v22 = vld [vmem:[%s7296_s8 + $0x600] ss:$28 sps:$4 sm:$0xff]  }
 0x396   :  { %v5480_v23 = vld [vmem:[%s7296_s8 + $0xc0] ss:$28 sps:$4 sm:$0xff]  }
 0x397   :  { %3902 = vmatpush1.bf16.msra.mxu0 %v5402_v24  ;;  %v5481_v24 = vld [vmem:[%s7296_s8 + $0x440] ss:$28 sps:$4 sm:$0xff]  }
 0x398   :  { %3943 = vmatpush1.bf16.msra.mxu1 %v5405_v25  ;;  %3903 = vmatprep.subr.bf16.mxu0 %v5410_v27  ;;  %v5482_v25 = vld [vmem:[%s7296_s8 + $0x248] ss:$28 sps:$4 sm:$0xff]  }
 0x399   :  { %3944 = vmatprep.subr.bf16.mxu1 %v5413_v28  ;;  %v5483_v27 = vld [vmem:[%s7296_s8 + $0x5c8] ss:$28 sps:$4 sm:$0xff]  }
 0x39a   :  { %v5484_v28 = vld [vmem:[%s7296_s8 + $0x88] ss:$28 sps:$4 sm:$0xff]  }
 0x39b   :  { %3904 = vmatpush1.bf16.msra.mxu0 %v5408_v30  ;;  %v5485_v30 = vld [vmem:[%s7296_s8 + $0x408] ss:$28 sps:$4 sm:$0xff]  }
 0x39c   :  { %3945 = vmatpush1.bf16.msra.mxu1 %v5411_v33  ;;  %3905 = vmatprep.subr.bf16.mxu0 %v5416_v34  ;;  %v5486_v33 = vld [vmem:[%s7296_s8 + $0x210] ss:$28 sps:$4 sm:$0xff]  }
 0x39d   :  { %3946 = vmatprep.subr.bf16.mxu1 %v5419_v35  ;;  %v5487_v34 = vld [vmem:[%s7296_s8 + $0x590] ss:$28 sps:$4 sm:$0xff]  }
 0x39e   :  { %v5488_v35 = vld [vmem:[%s7296_s8 + $0x50] ss:$28 sps:$4 sm:$0xff]  }
 0x39f   :  { %3906 = vmatpush2.bf16.msra.mxu0 %v5414_v13  ;;  %v5489_v13 = vld [vmem:[%s7296_s8 + $0x3d0] ss:$28 sps:$4 sm:$0xff]  }
 0x3a0   :  { %3947 = vmatpush2.bf16.msra.mxu1 %v5417_v36  ;;  %3907 = vmatprep.subr.bf16.mxu0 %v5422_v37  ;;  %v5490_v36 = vld [vmem:[%s7296_s8 + $0x1d8] ss:$28 sps:$4 sm:$0xff]  }
 0x3a1   :  { %3948 = vmatprep.subr.bf16.mxu1 %v5425_v38  ;;  %v5491_v37 = vld [vmem:[%s7296_s8 + $0x558] ss:$28 sps:$4 sm:$0xff]  }
 0x3a2   :  { %v5492_v38 = vld [vmem:[%s7296_s8 + $0x18] ss:$28 sps:$4 sm:$0xff]  }
 0x3a3   :  { %3908 = vmatpush2.bf16.msra.mxu0 %v5420_v39  ;;  %v5493_v39 = vld [vmem:[%s7296_s8 + $0x398] ss:$28 sps:$4 sm:$0xff]  }
 0x3a4   :  { %3949 = vmatpush2.bf16.msra.mxu1 %v5423_v40  ;;  %3909 = vmatprep.subr.bf16.mxu0 %v5428_v41  ;;  %v7245_v40 = vld [vmem:[%s7297_s9] sm:$0x7f] }
 0x3a5   :  { %3950 = vmatprep.subr.bf16.mxu1 %v5431_v42  ;;  %v2541_v41 = vrot.slane %v7245_v40, %v6493_v26  ;;  %v2545_v42 = vrot.slane %v7245_v40, %v6499_v52 }
 0x3a7   :  { %3910 = vmatpush2.bf16.msra.mxu0 %v5426_v44 }
 0x3a8   :  { %3951 = vmatpush2.bf16.msra.mxu1 %v5429_v20  ;;  %3911 = vmatprep.subr.bf16.mxu0 %v5434_v45 }
 0x3a9   :  { %3952 = vmatprep.subr.bf16.mxu1 %v5437_v3 }
 0x3ab   :  { %3912 = vmatpush2.bf16.msra.mxu0 %v5432_v46 }
 0x3ac   :  { %3953 = vmatpush2.bf16.msra.mxu1 %v5435_v31  ;;  %3913 = vmatprep.subr.bf16.mxu0 %v5440_v48 }
 0x3ad   :  { %3954 = vmatprep.subr.bf16.mxu1 %v5443_v19 }
 0x3af   :  { %3914 = vmatpush2.bf16.msra.mxu0 %v5438_v50 }
 0x3b0   :  { %3955 = vmatpush2.bf16.msra.mxu1 %v5441_v51  ;;  %3915 = vmatprep.subr.bf16.mxu0 %v5446_v53 }
 0x3b1   :  { %3956 = vmatprep.subr.bf16.mxu1 %v5449_v54 }
 0x3b3   :  { %3916 = vmatpush2.bf16.msra.mxu0 %v5444_v55 }
 0x3b4   :  { %3957 = vmatpush2.bf16.msra.mxu1 %v5447_v56  ;;  %3917 = vmatprep.subr.bf16.mxu0 %v5452_v57 }
 0x3b5   :  { %3958 = vmatprep.subr.bf16.mxu1 %v5455_v58 }
 0x3b7   :  { %3918 = vmatpush2.bf16.msra.mxu0 %v5450_v59 }
 0x3b8   :  { %3959 = vmatpush2.bf16.msra.mxu1 %v5453_v60  ;;  %3919 = vmatprep.subr.bf16.mxu0 %v5458_v61  ;;  %v2549_v60 = vrot.slane %v7245_v40, %v6505_v12 }
 0x3b9   :  { %3960 = vmatprep.subr.bf16.mxu1 %v5461_v62 }
 0x3bb   :  { %3920 = vmatpush2.bf16.msra.mxu0 %v5456_v63 }
 0x3bc   :  { %3961 = vmatpush2.bf16.msra.mxu1 %v5459_v0  ;;  %4722 = vmatprep.subr.bf16.mxu0 %v5462_v1 }
 0x3bd   :  { %4744 = vmatprep.subr.bf16.mxu1 %v5463_v2 }
 0x3be   :  { %3922 = vmatmul.mubr.bf16.vlgmr.msra.gmra.mxu0 %v6754_v29 }
 0x3bf   :  { %3963 = vmatmul.mubr.bf16.vlgmr.msra.gmra.mxu1 %v6756_v49  ;;  %4723 = vmatpush3.bf16.msra.mxu0 %v5464_v4 }
 0x3c0   :  { %4003 = vmatprep.mubr.bf16.mxu0 %v6744_v32  ;;  %4745 = vmatpush3.bf16.msra.mxu1 %v5465_v5  ;;  %v5472_v32 = vld [vmem:[%s7296_s8 + $0x130] ss:$28 sps:$4 sm:$0xff]  }
 0x3c1   :  { %4043 = vmatprep.mubr.bf16.mxu1 %v6746_v47  ;;  %4724 = vmatprep.subr.bf16.mxu0 %v5466_v6  ;;  %v5474_v47 = vld [vmem:[%s7296_s8 + $0x2b8] ss:$28 sps:$4 sm:$0xff]   ;;  %s5590_s8 = smov [#allocation4]  }
 0x3c2   :  { %4746 = vmatprep.subr.bf16.mxu1 %v5467_v7  ;;  %s4189_s9 = sshll.u32 %s5590_s8, 4  ;;  %s4190_s9 = int_to_ptr.vmem [resolvable:$true] %s4189_s9 }
 0x3c3   :  { %4725 = vmatpush3.bf16.msra.mxu0 %v5468_v8  ;;  %s5524_s18 = scalar_lea.vmem %s4190_s9, 32  ;;  %p5529_p1 = scmp.lt.s32.totalorder %s4190_s9, %s4190_s9 }
 0x3c4   :  { %4747 = vmatpush3.bf16.msra.mxu1 %v5469_v9  ;;  %4726 = vmatprep.subr.bf16.mxu0 %v5470_v10  ;;  %p5525_p0 = scmp.ne.s32.totalorder %s4190_s9, %s5524_s18  ;;  %p5530_p2 = scmp.lt.s32.totalorder %s5524_s18, %s5524_s18 }
 0x3c5   :  { %4748 = vmatprep.subr.bf16.mxu1 %v5471_v11 }
 0x3c6   :  { %p5531_p3 = por %p5530_p2, %p5529_p1 }
 0x3c7   :  { %4727 = vmatpush3.bf16.msra.mxu0 %v5472_v32 }
 0x3c8   :  { %4749 = vmatpush3.bf16.msra.mxu1 %v5473_v15  ;;  %4728 = vmatprep.subr.bf16.mxu0 %v5474_v47  ;;  %p5532_p4 = pnand %p5531_p3, %p5525_p0 }
 0x3c9   :  { %4750 = vmatprep.subr.bf16.mxu1 %v5475_v16 }
 0x3cb   :  { %4729 = vmatpush3.bf16.msra.mxu0 %v5476_v17 }
 0x3cc   :  { %4751 = vmatpush3.bf16.msra.mxu1 %v5477_v18  ;;  %4730 = vmatprep.subr.bf16.mxu0 %v5478_v21 }
 0x3cd   :  { %4752 = vmatprep.subr.bf16.mxu1 %v5479_v22 }
 0x3cf   :  { %4731 = vmatpush3.bf16.msra.mxu0 %v5480_v23 }
 0x3d0   :  { %4753 = vmatpush3.bf16.msra.mxu1 %v5481_v24  ;;  %4732 = vmatprep.subr.bf16.mxu0 %v5482_v25 }
 0x3d1   :  { %4754 = vmatprep.subr.bf16.mxu1 %v5483_v27 }
 0x3d3   :  { %4733 = vmatpush3.bf16.msra.mxu0 %v5484_v28 }
 0x3d4   :  { %4755 = vmatpush3.bf16.msra.mxu1 %v5485_v30  ;;  %4734 = vmatprep.subr.bf16.mxu0 %v5486_v33 }
 0x3d5   :  { %4756 = vmatprep.subr.bf16.mxu1 %v5487_v34 }
 0x3d7   :  { %4735 = vmatpush3.bf16.msra.mxu0 %v5488_v35 }
 0x3d8   :  { %4757 = vmatpush3.bf16.msra.mxu1 %v5489_v13  ;;  %4736 = vmatprep.subr.bf16.mxu0 %v5490_v36 }
 0x3d9   :  { %4758 = vmatprep.subr.bf16.mxu1 %v5491_v37 }
 0x3db   :  { %4737 = vmatpush3.bf16.msra.mxu0 %v5492_v38 }
 0x3dc   :  { %4759 = vmatpush3.bf16.msra.mxu1 %v5493_v39 }
 0x3de   :  { %4004 = vmatmul.mubr.bf16.vlgmr.msra.gmra.mxu0 %v6754_v29 }
 0x3df   :  { %4044 = vmatmul.mubr.bf16.vlgmr.msra.gmra.mxu1 %v6756_v49 }
 0x3fe   :  { %v3759_v44 = vpop.f32.mrf.mxu0  ;;  %v3800_v20 = vpop.f32.mrf.mxu1 }
 0x3ff   :  { %v3760_v45 = vadd.f32 %v3759_v44, %v2541_v41 }
 0x400   :  { %v3761_v3 = vpop.f32.mrf.mxu0  ;;  %v3802_v46 = vpop.f32.mrf.mxu1 }
 0x401   :  { %v3801_v31 = vadd.f32 %v3800_v20, %v3760_v45  ;;  %v3762_v29 = vadd.f32 %v3761_v3, %v2545_v42 }
 0x402   :  { %v3763_v48 = vpop.f32.mrf.mxu0  ;;  %v3804_v49 = vpop.f32.mrf.mxu1 }
 0x403   :  { %v4712_v19 = vmul.f32 -1.442695, %v3801_v31  ;;  %v3803_v50 = vadd.f32 %v3802_v46, %v3762_v29 }
 0x404   :  { %v3764_v51 = vpop.f32.mrf.mxu0  ;;  %v3805_v53 = vpop.f32.mrf.mxu1 }
 0x405   :  { %5496 = vpow2.f32 %v4712_v19  ;;  %v4713_v54 = vmul.f32 -1.442695, %v3803_v50 }
 0x407   :  { %5498 = vpow2.f32 %v4713_v54 }
 0x412   :  { %v5497_v26 = vpop.eup %5496 }
 0x413   :  { %v4072_v55 = vadd.f32 1.0, %v5497_v26 }
 0x414   :  { %v5499_v56 = vpop.eup %5498 }
 0x415   :  { %v4073_v52 = vadd.f32 1.0, %v5499_v56  ;;  %5500 = vrcp.f32 %v4072_v55 }
 0x417   :  { %5502 = vrcp.f32 %v4073_v52 }
 0x422   :  { %v5501_v57 = vpop.eup %5500 }
 0x424   :  { %v5503_v58 = vpop.eup %5502 }
 0x425   :  { %v4719_v59 = vpack.c.bf16 %v5503_v58, %v5501_v57 }
 0x426   :  { %5535 = shalt.err (!%p5532_p4)
}
 0x427   :  { %4192 = dma.vmem_to_hbm [thread:$0]  %s4190_s9, 32, %s7299_s11, [#allocation5]   ;;  %v2553_v61 = vrot.slane %v7245_v40, %v6508_v14 }
 0x428   :  { %s5591_s11 = smov [#allocation6]  }
 0x429   :  { %s4199_s21 = sshll.u32 %s5591_s11, 4  ;;  %s4200_s21 = int_to_ptr.vmem [resolvable:$true] %s4199_s21 }
 0x42a   :  { %s5544_s22 = scalar_lea.vmem %s4200_s21, 32  ;;  %p5549_p6 = scmp.lt.s32.totalorder %s4200_s21, %s4200_s21 }
 0x42b   :  { %p5545_p5 = scmp.ne.s32.totalorder %s4200_s21, %s5544_s22  ;;  %p5550_p7 = scmp.lt.s32.totalorder %s5544_s22, %s5544_s22 }
 0x42d   :  { %p5551_p8 = por %p5550_p7, %p5549_p6 }
 0x42f   :  { %p5552_p9 = pnand %p5551_p8, %p5545_p5 }
 0x43e   :  { %v3841_v62 = vpop.f32.mrf.mxu0  ;;  %v3882_v63 = vpop.f32.mrf.mxu1 }
 0x43f   :  { %v3842_v0 = vadd.f32 %v3841_v62, %v2549_v60 }
 0x440   :  { %v3843_v1 = vpop.f32.mrf.mxu0  ;;  %v3884_v12 = vpop.f32.mrf.mxu1 }
 0x441   :  { %v3883_v2 = vadd.f32 %v3882_v63, %v3842_v0  ;;  %v3844_v4 = vadd.f32 %v3843_v1, %v2553_v61 }
 0x442   :  { %v3845_v5 = vpop.f32.mrf.mxu0  ;;  %v3886_v6 = vpop.f32.mrf.mxu1 }
 0x443   :  { %v4714_v7 = vmul.f32 -1.442695, %v3883_v2  ;;  %v3885_v8 = vadd.f32 %v3884_v12, %v3844_v4 }
 0x444   :  { %v3846_v9 = vpop.f32.mrf.mxu0  ;;  %v3887_v10 = vpop.f32.mrf.mxu1 }
 0x445   :  { %5504 = vpow2.f32 %v4714_v7  ;;  %v4715_v11 = vmul.f32 -1.442695, %v3885_v8 }
 0x447   :  { %5506 = vpow2.f32 %v4715_v11 }
 0x452   :  { %v5505_v32 = vpop.eup %5504 }
 0x453   :  { %v4074_v14 = vadd.f32 1.0, %v5505_v32 }
 0x454   :  { %v5507_v15 = vpop.eup %5506 }
 0x455   :  { %5555 = shalt.err (!%p5552_p9)
}
 0x456   :  { %4202 = dma.vmem_to_hbm [thread:$0]  %s4200_s21, 32, %s7300_s12, [#allocation5]   ;;  %v4075_v47 = vadd.f32 1.0, %v5507_v15  ;;  %5508 = vrcp.f32 %v4074_v14  ;;  %v5592_v16 = vmov 1966171168   ;;  %v2560_v39 = vsub.s32 5, %v5776_v43 }
 0x457   :  { %v4111_v17 = vunpack.c.l.s4 %v5592_v16  ;;  %v2556_v41 = vsub.s32 4, %v5776_v43  ;;  %v2564_v31 = vsub.s32 6, %v5776_v43  ;;  %vm4156_vm4 = vcmask 1040384   ;;  %s5593_s12 = smov [#allocation2]  }
 0x458   :  { %5510 = vrcp.f32 %v4075_v47  ;;  %v2561_v42 = vrot.slane %v7245_v40, %v2560_v39  ;;  %vm4157_vm5 = vcmask 1041409   ;;  %vm4159_vm7 = vcmask 1042434   ;;  %s4179_s25 = sshll.u32 %s5593_s12, 4  ;;  %s4180_s25 = int_to_ptr.vmem [resolvable:$true] %s4179_s25 }
 0x459   :  { %v4112_v18 = vunpack.c.0.s8 %v4111_v17  ;;  %v2557_v44 = vrot.slane %v7245_v40, %v2556_v41  ;;  %v2565_v50 = vrot.slane %v7245_v40, %v2564_v31  ;;  %vm4158_vm6 = vmor %vm4157_vm5, %vm4156_vm4  ;;  %vm4161_vm9 = vcmask 1043459   ;;  %s5564_s26 = scalar_lea.vmem %s4180_s25, 112  ;;  %s5568_s27 = scalar_lea.vmem %s4180_s25, 128 }
 0x45a   :  { %vm4160_vm8 = vmor %vm4159_vm7, %vm4158_vm6  ;;  %vm4163_vm11 = vcmask 1044484   ;;  %vm4165_vm13 = vcmask 1045509   ;;  %vm4167_vm15 = vcmask 129030   ;;  %p5565_p10 = scmp.ne.s32.totalorder %s4180_s25, %s5564_s26  ;;  %p5569_p11 = scmp.lt.s32.totalorder %s4180_s25, %s4180_s25 }
 0x45b   :  { %v7262_v22 = vsub.s32 %v4112_v18, %v5776_v43  ;;  %vm4162_vm10 = vmor %vm4161_vm9, %vm4160_vm8  ;;  %p5570_p12 = scmp.lt.s32.totalorder %s5568_s27, %s5564_s26 }
 0x45c   :  { %vm4164_vm12 = vmor %vm4163_vm11, %vm4162_vm10 }
 0x45d   :  { %v7265_v25 = vrot.slane %v4719_v59, %v7262_v22  ;;  %vm4166_vm14 = vmor %vm4165_vm13, %vm4164_vm12  ;;  %p5571_p13 = por %p5570_p12, %p5569_p11 }
 0x45e   :  { %vm4168_vm0 = vmor %vm4167_vm15, %vm4166_vm14 }
 0x45f   :  { %p5572_p0 = pnand %p5571_p13, %p5565_p10 }
 0x463   :  { %v5509_v21 = vpop.eup %5508 }
 0x465   :  { %v5511_v23 = vpop.eup %5510 }
 0x466   :  { %v4720_v24 = vpack.c.bf16 %v5511_v23, %v5509_v21 }
 0x468   :  { %v7268_v27 = vrot.slane %v4720_v24, %v7262_v22 }
 0x46a   :  { %v4138_v28 = vcombine.low %v7265_v25, %v7268_v27 }
 0x46c   :  { %v4146_v9 = vrot.slane %v4138_v28, %v7262_v22 }
 0x47e   :  { %v3923_v30 = vpop.f32.mrf.mxu0 }
 0x47f   :  { %v3964_v33 = vpop.f32.mrf.mxu1  ;;  %v3924_v45 = vadd.f32 %v3923_v30, %v2557_v44 }
 0x480   :  { %v3925_v34 = vpop.f32.mrf.mxu0 }
 0x481   :  { %v3966_v35 = vpop.f32.mrf.mxu1  ;;  %v3926_v20 = vadd.f32 %v3925_v34, %v2561_v42  ;;  %v3965_v46 = vadd.f32 %v3964_v33, %v3924_v45 }
 0x482   :  { %v3927_v13 = vpop.f32.mrf.mxu0 }
 0x483   :  { %v3968_v36 = vpop.f32.mrf.mxu1  ;;  %v3967_v3 = vadd.f32 %v3966_v35, %v3926_v20  ;;  %v4716_v49 = vmul.f32 -1.442695, %v3965_v46 }
 0x484   :  { %v3928_v37 = vpop.f32.mrf.mxu0 }
 0x485   :  { %v3969_v38 = vpop.f32.mrf.mxu1  ;;  %v4717_v29 = vmul.f32 -1.442695, %v3967_v3 }
 0x487   :  { %5512 = vpow2.f32 %v4717_v29 }
 0x488   :  { %5514 = vpow2.f32 %v4716_v49 }
 0x494   :  { %v5513_v43 = vpop.eup %5512 }
 0x495   :  { %v5515_v61 = vpop.eup %5514  ;;  %v4077_v62 = vadd.f32 1.0, %v5513_v43 }
 0x496   :  { %v4076_v63 = vadd.f32 1.0, %v5515_v61 }
 0x49e   :  { %v4738_v48 = vpop.f32.mrf.mxu0 }
 0x49f   :  { %v4760_v19 = vpop.f32.mrf.mxu1 }
 0x4a0   :  { %v4739_v51 = vpop.f32.mrf.mxu0 }
 0x4a1   :  { %v4740_v53 = vadd.f32 %v4739_v51, %v4738_v48  ;;  %v4761_v54 = vpop.f32.mrf.mxu1 }
 0x4a2   :  { %v4741_v26 = vpop.f32.mrf.mxu0  ;;  %v4762_v56 = vadd.f32 %v4761_v54, %v4760_v19 }
 0x4a3   :  { %v4006_v55 = vadd.f32 %v4740_v53, %v2565_v50  ;;  %v4763_v52 = vpop.f32.mrf.mxu1 }
 0x4a4   :  { %v4742_v57 = vpop.f32.mrf.mxu0 }
 0x4a5   :  { %v4046_v58 = vadd.f32 %v4762_v56, %v4006_v55  ;;  %v4764_v59 = vpop.f32.mrf.mxu1 }
 0x4a7   :  { %v4718_v60 = vmul.f32 -1.442695, %v4046_v58 }
 0x4a9   :  { %5516 = vpow2.f32 %v4718_v60 }
 0x4aa   :  { %5518 = vrcp.f32 %v4077_v62 }
 0x4ab   :  { %5520 = vrcp.f32 %v4076_v63 }
 0x4b6   :  { %v5517_v40 = vpop.eup %5516 }
 0x4b7   :  { %v4078_v0 = vadd.f32 1.0, %v5517_v40  ;;  %v5519_v1 = vpop.eup %5518 }
 0x4b8   :  { %v5521_v12 = vpop.eup %5520 }
 0x4b9   :  { %5522 = vrcp.f32 %v4078_v0  ;;  %v4721_v2 = vpack.c.bf16 %v5519_v1, %v5521_v12 }
 0x4bb   :  { %v4130_v6 = vrot.slane %v4721_v2, %v7262_v22 }
 0x4c6   :  { %v5523_v4 = vpop.eup %5522 }
 0x4c7   :  { %v4099_v5 = vpack.c.bf16 %v5523_v4, %v5523_v4 }
 0x4c9   :  { %v4137_v7 = vrot.slane %v4099_v5, %v7262_v22 }
 0x4cb   :  { %v4139_v8 = vcombine.low %v4130_v6, %v4137_v7 }
 0x4cd   :  { %v4153_v10 = vrot.slane %v4139_v8, %v7262_v22 }
 0x4cf   :  { %v4154_v11 = vcombine.low %v4146_v9, %v4153_v10 }
 0x4d1   :  { %4169 = vst.msk [vmem:[#allocation2] sm:$0x7f] %vm4168_vm0, %v4154_v11 }
 0x4d2   :  { %5575 = shalt.err (!%p5572_p0)
}
 0x4d3   :  { %4182 = dma.vmem_to_hbm [thread:$0]  %s4180_s25, 112, %s7298_s10, [#allocation3]  }
 0x4d4   :  { %5584 = dma.done.wait [#allocation3], 112  }
 0x4d5   :  { %5585 = vsyncadd [#allocation3], 4294967184 }
 0x4d6   :  { %5586 = dma.done.wait [#allocation5], 64  }
 0x4d7   :  { %5587 = vsyncadd [#allocation5], 4294967232 }
 0x4d8   :  { %4212 = vsyncpa [#allocation3], 1 }
 0x4d9   :  { %4213 = vsyncpa [#allocation5], 1 }

</bundles_post_ra>
